<compile_context>
chip_gen: v7x
topology: tpu7x:2x2x1
jax: 0.10.0
libtpu: 0.0.40
codegen_flags: <defaults>
</compile_context>

<pallas_src>
import math
from functools import partial

import jax
import jax.numpy as jnp
from jax.experimental import pallas as pl
from jax.experimental.pallas import tpu as pltpu

# Row layout of the packed vector-parameter array (shared by kernel & host).
(_ROW_BQKV, _ROW_BO, _ROW_G1, _ROW_BE1,
 _ROW_B1, _ROW_B2, _ROW_G2, _ROW_BE2) = range(8)
_LN_EPS = 1e-5


# ----------------------------------------------------------------------------
# Pallas kernel: one encoder layer for a block of `batch_block` batch rows
# ----------------------------------------------------------------------------
def encoder_layer_kernel(lens_ref,                              # scalar prefetch (SMEM)
                         x_ref, wqkv_ref, wo_ref, w1_ref, w2_ref, vecs_ref,
                         o_ref,                                 # output (VMEM)
                         *, batch_block, num_heads, seq_len):
    D = x_ref.shape[1]
    D3 = wqkv_ref.shape[1]
    F = w1_ref.shape[1]
    Bblk, S, H = batch_block, seq_len, num_heads
    hd = D // H

    b0 = pl.program_id(0) * Bblk                                # first batch row of this block
    x2 = x_ref[...]                                             # (Bblk*S, D) f32

    # ---- fused QKV projection: one MXU matmul over all batch rows ----------
    # 1/sqrt(hd) and the q bias are already folded into the Q columns host-side.
    qkv = jnp.dot(x2.astype(jnp.bfloat16), wqkv_ref[...],
                  preferred_element_type=jnp.float32)
    qkv = qkv + vecs_ref[_ROW_BQKV:_ROW_BQKV + 1, 0:D3]         # (Bblk*S, 3D) f32
    qkv_bf = qkv.astype(jnp.bfloat16)                           # cast once for the MXU

    col = jax.lax.broadcasted_iota(jnp.int32, (1, S), 1)

    # ---- attention core: per-(batch-row, head) 8x8 contractions ------------
    out_rows = []
    for b in range(Bblk):
        length = lens_ref[b0 + b]                               # valid-key count (SMEM scalar)
        # Additive key-padding mask built in-kernel (0 on valid keys, -1e9 on pad).
        # Note: if length == 0 every key is masked -> uniform attention over pad
        # (PyTorch would NaN); demo lengths are all > 0.
        key_mask = jnp.where(col < length, 0.0, -1e9).astype(jnp.float32)   # (1, S)
        r0 = b * S
        head_outs = []
        for h in range(H):
            q = qkv_bf[r0:r0 + S, h * hd:(h + 1) * hd]          # (S, hd) bf16 (pre-scaled)
            k = qkv_bf[r0:r0 + S, D + h * hd:D + (h + 1) * hd]
            v = qkv_bf[r0:r0 + S, 2 * D + h * hd:2 * D + (h + 1) * hd]
            s = jax.lax.dot_general(q, k, (((1,), (1,)), ((), ())),
                                    preferred_element_type=jnp.float32)     # (S, S)
            s = s + key_mask
            s = s - jnp.max(s, axis=-1, keepdims=True)
            p = jnp.exp(s)                                       # unnormalized, f32
            l = jnp.sum(p, axis=-1, keepdims=True)               # (S, 1)
            o = jnp.dot(p.astype(jnp.bfloat16), v,
                        preferred_element_type=jnp.float32)       # (S, hd)
            # deferred softmax normalization (EUP approx reciprocal = free slot)
            o = o * pl.reciprocal(l, approx=True)
            head_outs.append(o)
        out_rows.append(jnp.concatenate(head_outs, axis=-1))     # (S, D) f32
    values = out_rows[0] if Bblk == 1 else jnp.concatenate(out_rows, axis=0)  # (Bblk*S, D)

    # ---- fused output projection: head reduction folded into the contraction
    attn = jnp.dot(values.astype(jnp.bfloat16), wo_ref[...],
                   preferred_element_type=jnp.float32)
    attn = attn + vecs_ref[_ROW_BO:_ROW_BO + 1, 0:D]             # (Bblk*S, D)

    # dropout1 == identity (eval mode)

    # ---- residual + LayerNorm 1 (f32) ---------------------------------------
    h1 = attn + x2
    mu1 = jnp.mean(h1, axis=-1, keepdims=True)
    var1 = jnp.mean((h1 - mu1) ** 2, axis=-1, keepdims=True)
    h1n = ((h1 - mu1) * jax.lax.rsqrt(var1 + _LN_EPS)
           * vecs_ref[_ROW_G1:_ROW_G1 + 1, 0:D] + vecs_ref[_ROW_BE1:_ROW_BE1 + 1, 0:D])

    # ---- position-wise FFN: linear1 -> (dropout=id) -> linear2 -> ReLU ------
    # (ReLU after linear2 matches the PyTorch reference exactly.)
    f = jnp.dot(h1n.astype(jnp.bfloat16), w1_ref[...],
                preferred_element_type=jnp.float32) + vecs_ref[_ROW_B1:_ROW_B1 + 1, 0:F]
    f = jnp.dot(f.astype(jnp.bfloat16), w2_ref[...],
                preferred_element_type=jnp.float32) + vecs_ref[_ROW_B2:_ROW_B2 + 1, 0:D]
    f = jnp.maximum(f, 0.0)

    # dropout2 == identity (eval mode)

    # ---- residual + LayerNorm 2 ---------------------------------------------
    h2 = f + h1n
    mu2 = jnp.mean(h2, axis=-1, keepdims=True)
    var2 = jnp.mean((h2 - mu2) ** 2, axis=-1, keepdims=True)
    o_ref[...] = ((h2 - mu2) * jax.lax.rsqrt(var2 + _LN_EPS)
                  * vecs_ref[_ROW_G2:_ROW_G2 + 1, 0:D] + vecs_ref[_ROW_BE2:_ROW_BE2 + 1, 0:D])


# ----------------------------------------------------------------------------
# Wrapper: grid / BlockSpecs / scalar prefetch
# ----------------------------------------------------------------------------
def _num_batch_blocks(B):
    """One grid step per TensorCore that can be fed.

    v7x has 2 TCs per chip -> give each a batch block (feedback target v7x);
    v5e/v6e have 1 TC, so a single grid step avoids ~0.35us/step of pipeline
    overhead (feedback targets v5e/v6e)."""
    try:
        kind = jax.devices()[0].device_kind.lower()
    except Exception:
        kind = ""
    cores = 2 if "v7" in kind else 1
    n = max(1, min(B, cores))
    while B % n:               # keep batch blocks equal-sized
        n -= 1
    return n


def encoder_layer(x, lengths, kp, num_heads):
    """x: (B, S, D) f32; lengths: (B,) int32 valid-key counts; kp: kernel params."""
    B, S, D = x.shape
    D3 = kp["wqkv"].shape[1]
    F = kp["w1"].shape[1]
    R, W = kp["vecs"].shape
    H = num_heads
    hd = D // H
    lengths = jnp.asarray(lengths, dtype=jnp.int32)

    n_blocks = _num_batch_blocks(B)
    bblk = B // n_blocks
    rows = bblk * S
    x_flat = x.reshape(B * S, D)           # fold batch into the matmul M dimension

    flops = B * S * (2 * D * D3                      # fused qkv projection
                     + H * (2 * S * hd) * 2          # scores + p@v
                     + 2 * D * D                     # output projection
                     + 2 * D * F + 2 * F * D)        # ffn
    weight_bytes = sum(int(a.size) * a.dtype.itemsize
                       for a in (kp["wqkv"], kp["wo"], kp["w1"], kp["w2"], kp["vecs"]))
    cost = pl.CostEstimate(flops=int(flops),
                           transcendentals=int(B * H * S * S),
                           bytes_accessed=int(2 * B * S * D * 4 + weight_bytes))

    # Constant-index weight specs could use pipeline_mode=pl.Buffered(1); at a
    # 1-2 step grid the revisited blocks are not re-fetched anyway, so omitted.
    grid_spec = pltpu.PrefetchScalarGridSpec(
        num_scalar_prefetch=1,                       # `lengths` -> SMEM
        grid=(n_blocks,),
        in_specs=[
            pl.BlockSpec((rows, D), lambda i, lens: (i, 0)),
            pl.BlockSpec((D, D3), lambda i, lens: (0, 0)),
            pl.BlockSpec((D, D), lambda i, lens: (0, 0)),
            pl.BlockSpec((D, F), lambda i, lens: (0, 0)),
            pl.BlockSpec((F, D), lambda i, lens: (0, 0)),
            pl.BlockSpec((R, W), lambda i, lens: (0, 0)),
        ],
        out_specs=pl.BlockSpec((rows, D), lambda i, lens: (i, 0)),
    )
    out_flat = pl.pallas_call(
        partial(encoder_layer_kernel, batch_block=bblk, num_heads=H, seq_len=S),
        out_shape=jax.ShapeDtypeStruct((B * S, D), jnp.float32),
        grid_spec=grid_spec,
        compiler_params=pltpu.CompilerParams(dimension_semantics=("parallel",)),
        cost_estimate=cost,
    )(lengths, x_flat, kp["wqkv"], kp["wo"], kp["w1"], kp["w2"], kp["vecs"])
    return out_flat.reshape(B, S, D)


# ----------------------------------------------------------------------------
# Parameters: PyTorch-layout init -> fused / packed kernel layout
# ----------------------------------------------------------------------------
def init_torch_params(key, d_model, ffn_hidden):
    ks = jax.random.split(key, 8)
    s = 0.05
    return {
        "qkv_w": s * jax.random.normal(ks[0], (3 * d_model, d_model), jnp.float32),
        "qkv_b": s * jax.random.normal(ks[1], (3 * d_model,), jnp.float32),
        "out_w": s * jax.random.normal(ks[2], (d_model, d_model), jnp.float32),
        "out_b": s * jax.random.normal(ks[3], (d_model,), jnp.float32),
        "ln1_g": jnp.ones((d_model,), jnp.float32),
        "ln1_b": jnp.zeros((d_model,), jnp.float32),
        "lin1_w": s * jax.random.normal(ks[4], (ffn_hidden, d_model), jnp.float32),
        "lin1_b": s * jax.random.normal(ks[5], (ffn_hidden,), jnp.float32),
        "lin2_w": s * jax.random.normal(ks[6], (d_model, ffn_hidden), jnp.float32),
        "lin2_b": s * jax.random.normal(ks[7], (d_model,), jnp.float32),
        "ln2_g": jnp.ones((d_model,), jnp.float32),
        "ln2_b": jnp.zeros((d_model,), jnp.float32),
    }


def prepare_kernel_params(tp, num_heads):
    D = tp["out_w"].shape[0]
    H = num_heads
    assert D % H == 0
    hd = D // H
    F = tp["lin1_w"].shape[0]
    scale = 1.0 / math.sqrt(hd)

    # torch qkv_linear output feature j = h*3*hd + c*hd + m (c in {q,k,v}).
    # Re-order to [all Q heads | all K heads | all V heads] (head-major within each)
    # and fuse into a single (D, 3D) matrix; fold 1/sqrt(hd) into the Q part.
    w4 = tp["qkv_w"].reshape(H, 3, hd, D)
    w_perm = jnp.transpose(w4, (1, 0, 2, 3)).reshape(3 * D, D)       # rows ordered (c, h, m)
    b_perm = jnp.transpose(tp["qkv_b"].reshape(H, 3, hd), (1, 0, 2)).reshape(3 * D)
    scale_vec = jnp.concatenate([jnp.full((D,), scale, jnp.float32),
                                 jnp.ones((2 * D,), jnp.float32)])
    wqkv = (w_perm * scale_vec[:, None]).T.astype(jnp.bfloat16)      # (D, 3D)
    bqkv = (b_perm * scale_vec).astype(jnp.float32)                  # (3D,)

    wo = tp["out_w"].T.astype(jnp.bfloat16)                          # (D, D), head-major rows
    w1 = tp["lin1_w"].T.astype(jnp.bfloat16)                         # (D, F)
    w2 = tp["lin2_w"].T.astype(jnp.bfloat16)                         # (F, D)

    lane = ((max(3 * D, F, D) + 127) // 128) * 128
    vecs = jnp.zeros((8, lane), jnp.float32)
    vecs = vecs.at[_ROW_BQKV, :3 * D].set(bqkv)
    vecs = vecs.at[_ROW_BO, :D].set(tp["out_b"])
    vecs = vecs.at[_ROW_G1, :D].set(tp["ln1_g"])
    vecs = vecs.at[_ROW_BE1, :D].set(tp["ln1_b"])
    vecs = vecs.at[_ROW_B1, :F].set(tp["lin1_b"])
    vecs = vecs.at[_ROW_B2, :D].set(tp["lin2_b"])
    vecs = vecs.at[_ROW_G2, :D].set(tp["ln2_g"])
    vecs = vecs.at[_ROW_BE2, :D].set(tp["ln2_b"])

    return {"wqkv": wqkv, "wo": wo, "w1": w1, "w2": w2, "vecs": vecs}


# ----------------------------------------------------------------------------
# Pure-JAX f32 reference (mirrors the PyTorch module) for a sanity check
# ----------------------------------------------------------------------------
def _layernorm(h, g, b):
    mu = jnp.mean(h, axis=-1, keepdims=True)
    var = jnp.mean((h - mu) ** 2, axis=-1, keepdims=True)
    return (h - mu) * jax.lax.rsqrt(var + _LN_EPS) * g + b


def encoder_layer_ref(x, lengths, tp, num_heads):
    B, S, D = x.shape
    H = num_heads
    hd = D // H
    mask = jnp.where(jnp.arange(S)[None, :] < lengths[:, None], 0.0, -1e9)  # (B, S)
    mask = mask[:, None, None, :]                                           # key-padding mask

    qkv = x @ tp["qkv_w"].T + tp["qkv_b"]
    qkv = qkv.reshape(B, S, H, 3 * hd).transpose(0, 2, 1, 3)
    q, k, v = jnp.split(qkv, 3, axis=-1)
    scores = q @ jnp.swapaxes(k, -1, -2) / math.sqrt(hd) + mask
    p = jax.nn.softmax(scores, axis=-1)
    vals = (p @ v).transpose(0, 2, 1, 3).reshape(B, S, D)
    attn = vals @ tp["out_w"].T + tp["out_b"]

    h1n = _layernorm(attn + x, tp["ln1_g"], tp["ln1_b"])
    f = h1n @ tp["lin1_w"].T + tp["lin1_b"]
    f = f @ tp["lin2_w"].T + tp["lin2_b"]
    f = jnp.maximum(f, 0.0)                          # ReLU after linear2, as in reference
    return _layernorm(f + h1n, tp["ln2_g"], tp["ln2_b"])


# ----------------------------------------------------------------------------
if __name__ == "__main__":
    d_model, num_heads, ffn_hidden = 32, 4, 64
    B, S = 2, 8

    key = jax.random.PRNGKey(0)
    kx, kp = jax.random.split(key)
    x = jax.random.normal(kx, (B, S, d_model), jnp.float32)
    lengths = jnp.array([6, 5], dtype=jnp.int32)     # valid (non-pad) key counts per batch row

    torch_params = init_torch_params(kp, d_model, ffn_hidden)
    kernel_params = prepare_kernel_params(torch_params, num_heads)

    out = encoder_layer(x, lengths, kernel_params, num_heads)
    out = jax.block_until_ready(out)

    ref = encoder_layer_ref(x, lengths, torch_params, num_heads)
    assert out.shape == (B, S, d_model)
    assert bool(jnp.all(jnp.isfinite(out)))
    assert float(jnp.max(jnp.abs(out - ref))) < 0.1   # bf16 MXU operands vs f32 reference
    print("KERNEL_OK")
</pallas_src>

<mosaic_0001>
module attributes {stable_mosaic.version = 11 : i64} {
  func.func @encoder_layer_kernel(%arg0: i32, %arg1: memref<2xi32, #tpu.memory_space<smem>>, %arg2: memref<16x32xf32, #tpu.memory_space<vmem>>, %arg3: memref<32x96xbf16, #tpu.memory_space<vmem>>, %arg4: memref<32x32xbf16, #tpu.memory_space<vmem>>, %arg5: memref<32x64xbf16, #tpu.memory_space<vmem>>, %arg6: memref<64x32xbf16, #tpu.memory_space<vmem>>, %arg7: memref<8x128xf32, #tpu.memory_space<vmem>>, %arg8: memref<16x32xf32, #tpu.memory_space<vmem>>) attributes {dimension_semantics = [#tpu.dimension_semantics<parallel>], iteration_bounds = array<i64: 1>, scalar_prefetch = 1 : i64, scratch_operands = 0 : i64, tpu.core_type = #tpu.core_type<tc>, window_params = [{transform_indices = @transform_0, window_bounds = array<i64: 16, 32>}, {pipeline_mode = #tpu.pipeline_mode<synchronous>, transform_indices = @transform_1, window_bounds = array<i64: 32, 96>}, {pipeline_mode = #tpu.pipeline_mode<synchronous>, transform_indices = @transform_2, window_bounds = array<i64: 32, 32>}, {pipeline_mode = #tpu.pipeline_mode<synchronous>, transform_indices = @transform_3, window_bounds = array<i64: 32, 64>}, {pipeline_mode = #tpu.pipeline_mode<synchronous>, transform_indices = @transform_4, window_bounds = array<i64: 64, 32>}, {pipeline_mode = #tpu.pipeline_mode<synchronous>, transform_indices = @transform_5, window_bounds = array<i64: 8, 128>}, {transform_indices = @transform_6, window_bounds = array<i64: 16, 32>}]} {
    %c2_i32 = arith.constant 2 : i32
    %0 = arith.muli %arg0, %c2_i32 : i32
    %c0 = arith.constant 0 : index
    %c0_0 = arith.constant 0 : index
    %1 = vector.load %arg2[%c0, %c0_0] : memref<16x32xf32, #tpu.memory_space<vmem>>, vector<16x32xf32>
    %2 = arith.truncf %1 : vector<16x32xf32> to vector<16x32xbf16>
    %c0_1 = arith.constant 0 : index
    %c0_2 = arith.constant 0 : index
    %3 = vector.load %arg3[%c0_1, %c0_2] : memref<32x96xbf16, #tpu.memory_space<vmem>>, vector<32x96xbf16>
    %cst = arith.constant dense<0.000000e+00> : vector<16x96xf32>
    %4 = tpu.matmul %2, %3, %cst {dimension_numbers = #tpu.dot_dimension_numbers<[1], [0], [0], [1], [0, 0, 1, 1], [], []>} : vector<16x32xbf16>, vector<32x96xbf16>, vector<16x96xf32> -> vector<16x96xf32>
    %c0_3 = arith.constant 0 : index
    %c0_4 = arith.constant 0 : index
    %5 = vector.load %arg7[%c0_3, %c0_4] : memref<8x128xf32, #tpu.memory_space<vmem>>, vector<1x96xf32>
    %6 = vector.broadcast %5 : vector<1x96xf32> to vector<16x96xf32>
    %7 = arith.addf %4, %6 : vector<16x96xf32>
    %8 = arith.truncf %7 : vector<16x96xf32> to vector<16x96xbf16>
    %9 = tpu.iota {dimensions = array<i32: 1>} : vector<1x8xi32>
    %c0_i32 = arith.constant 0 : i32
    %10 = arith.addi %0, %c0_i32 : i32
    %11 = arith.index_cast %10 : i32 to index
    %12 = memref.load %arg1[%11] : memref<2xi32, #tpu.memory_space<smem>>
    %13 = vector.broadcast %12 : i32 to vector<1x8xi32>
    %14 = arith.cmpi slt, %9, %13 : vector<1x8xi32>
    %cst_5 = arith.constant 0.000000e+00 : f32
    %cst_6 = arith.constant -1.000000e+09 : f32
    %15 = vector.broadcast %cst_5 : f32 to vector<1x8xf32>
    %16 = vector.broadcast %cst_6 : f32 to vector<1x8xf32>
    %17 = arith.select %14, %15, %16 : vector<1x8xi1>, vector<1x8xf32>
    %18 = vector.extract_strided_slice %8 {offsets = [0, 0], sizes = [8, 8], strides = [1, 1]} : vector<16x96xbf16> to vector<8x8xbf16>
    %19 = vector.extract_strided_slice %8 {offsets = [0, 32], sizes = [8, 8], strides = [1, 1]} : vector<16x96xbf16> to vector<8x8xbf16>
    %20 = vector.extract_strided_slice %8 {offsets = [0, 64], sizes = [8, 8], strides = [1, 1]} : vector<16x96xbf16> to vector<8x8xbf16>
    %cst_7 = arith.constant dense<0.000000e+00> : vector<8x8xf32>
    %21 = tpu.matmul %18, %19, %cst_7 {dimension_numbers = #tpu.dot_dimension_numbers<[1], [1], [0], [0], [0, 0, 1, 0], [], []>} : vector<8x8xbf16>, vector<8x8xbf16>, vector<8x8xf32> -> vector<8x8xf32>
    %22 = vector.broadcast %17 : vector<1x8xf32> to vector<8x8xf32>
    %23 = arith.addf %21, %22 : vector<8x8xf32>
    %cst_8 = arith.constant dense<0xFF800000> : vector<8xf32>
    %24 = vector.multi_reduction <maximumf>, %23, %cst_8 [1] : vector<8x8xf32> to vector<8xf32>
    %25 = vector.shape_cast %24 : vector<8xf32> to vector<8x1xf32>
    %26 = vector.broadcast %25 : vector<8x1xf32> to vector<8x8xf32>
    %27 = arith.subf %23, %26 : vector<8x8xf32>
    %28 = math.exp %27 : vector<8x8xf32>
    %cst_9 = arith.constant dense<0.000000e+00> : vector<8xf32>
    %29 = vector.multi_reduction <add>, %28, %cst_9 [1] : vector<8x8xf32> to vector<8xf32>
    %30 = vector.shape_cast %29 : vector<8xf32> to vector<8x1xf32>
    %31 = arith.truncf %28 : vector<8x8xf32> to vector<8x8xbf16>
    %cst_10 = arith.constant dense<0.000000e+00> : vector<8x8xf32>
    %32 = tpu.matmul %31, %20, %cst_10 {dimension_numbers = #tpu.dot_dimension_numbers<[1], [0], [0], [1], [0, 0, 1, 1], [], []>} : vector<8x8xbf16>, vector<8x8xbf16>, vector<8x8xf32> -> vector<8x8xf32>
    %33 = tpu.reciprocal %30 {approx = true} : vector<8x1xf32> -> vector<8x1xf32>
    %34 = vector.broadcast %33 : vector<8x1xf32> to vector<8x8xf32>
    %35 = arith.mulf %32, %34 : vector<8x8xf32>
    %36 = vector.extract_strided_slice %8 {offsets = [0, 8], sizes = [8, 8], strides = [1, 1]} : vector<16x96xbf16> to vector<8x8xbf16>
    %37 = vector.extract_strided_slice %8 {offsets = [0, 40], sizes = [8, 8], strides = [1, 1]} : vector<16x96xbf16> to vector<8x8xbf16>
    %38 = vector.extract_strided_slice %8 {offsets = [0, 72], sizes = [8, 8], strides = [1, 1]} : vector<16x96xbf16> to vector<8x8xbf16>
    %cst_11 = arith.constant dense<0.000000e+00> : vector<8x8xf32>
    %39 = tpu.matmul %36, %37, %cst_11 {dimension_numbers = #tpu.dot_dimension_numbers<[1], [1], [0], [0], [0, 0, 1, 0], [], []>} : vector<8x8xbf16>, vector<8x8xbf16>, vector<8x8xf32> -> vector<8x8xf32>
    %40 = vector.broadcast %17 : vector<1x8xf32> to vector<8x8xf32>
    %41 = arith.addf %39, %40 : vector<8x8xf32>
    %cst_12 = arith.constant dense<0xFF800000> : vector<8xf32>
    %42 = vector.multi_reduction <maximumf>, %41, %cst_12 [1] : vector<8x8xf32> to vector<8xf32>
    %43 = vector.shape_cast %42 : vector<8xf32> to vector<8x1xf32>
    %44 = vector.broadcast %43 : vector<8x1xf32> to vector<8x8xf32>
    %45 = arith.subf %41, %44 : vector<8x8xf32>
    %46 = math.exp %45 : vector<8x8xf32>
    %cst_13 = arith.constant dense<0.000000e+00> : vector<8xf32>
    %47 = vector.multi_reduction <add>, %46, %cst_13 [1] : vector<8x8xf32> to vector<8xf32>
    %48 = vector.shape_cast %47 : vector<8xf32> to vector<8x1xf32>
    %49 = arith.truncf %46 : vector<8x8xf32> to vector<8x8xbf16>
    %cst_14 = arith.constant dense<0.000000e+00> : vector<8x8xf32>
    %50 = tpu.matmul %49, %38, %cst_14 {dimension_numbers = #tpu.dot_dimension_numbers<[1], [0], [0], [1], [0, 0, 1, 1], [], []>} : vector<8x8xbf16>, vector<8x8xbf16>, vector<8x8xf32> -> vector<8x8xf32>
    %51 = tpu.reciprocal %48 {approx = true} : vector<8x1xf32> -> vector<8x1xf32>
    %52 = vector.broadcast %51 : vector<8x1xf32> to vector<8x8xf32>
    %53 = arith.mulf %50, %52 : vector<8x8xf32>
    %54 = vector.extract_strided_slice %8 {offsets = [0, 16], sizes = [8, 8], strides = [1, 1]} : vector<16x96xbf16> to vector<8x8xbf16>
    %55 = vector.extract_strided_slice %8 {offsets = [0, 48], sizes = [8, 8], strides = [1, 1]} : vector<16x96xbf16> to vector<8x8xbf16>
    %56 = vector.extract_strided_slice %8 {offsets = [0, 80], sizes = [8, 8], strides = [1, 1]} : vector<16x96xbf16> to vector<8x8xbf16>
    %cst_15 = arith.constant dense<0.000000e+00> : vector<8x8xf32>
    %57 = tpu.matmul %54, %55, %cst_15 {dimension_numbers = #tpu.dot_dimension_numbers<[1], [1], [0], [0], [0, 0, 1, 0], [], []>} : vector<8x8xbf16>, vector<8x8xbf16>, vector<8x8xf32> -> vector<8x8xf32>
    %58 = vector.broadcast %17 : vector<1x8xf32> to vector<8x8xf32>
    %59 = arith.addf %57, %58 : vector<8x8xf32>
    %cst_16 = arith.constant dense<0xFF800000> : vector<8xf32>
    %60 = vector.multi_reduction <maximumf>, %59, %cst_16 [1] : vector<8x8xf32> to vector<8xf32>
    %61 = vector.shape_cast %60 : vector<8xf32> to vector<8x1xf32>
    %62 = vector.broadcast %61 : vector<8x1xf32> to vector<8x8xf32>
    %63 = arith.subf %59, %62 : vector<8x8xf32>
    %64 = math.exp %63 : vector<8x8xf32>
    %cst_17 = arith.constant dense<0.000000e+00> : vector<8xf32>
    %65 = vector.multi_reduction <add>, %64, %cst_17 [1] : vector<8x8xf32> to vector<8xf32>
    %66 = vector.shape_cast %65 : vector<8xf32> to vector<8x1xf32>
    %67 = arith.truncf %64 : vector<8x8xf32> to vector<8x8xbf16>
    %cst_18 = arith.constant dense<0.000000e+00> : vector<8x8xf32>
    %68 = tpu.matmul %67, %56, %cst_18 {dimension_numbers = #tpu.dot_dimension_numbers<[1], [0], [0], [1], [0, 0, 1, 1], [], []>} : vector<8x8xbf16>, vector<8x8xbf16>, vector<8x8xf32> -> vector<8x8xf32>
    %69 = tpu.reciprocal %66 {approx = true} : vector<8x1xf32> -> vector<8x1xf32>
    %70 = vector.broadcast %69 : vector<8x1xf32> to vector<8x8xf32>
    %71 = arith.mulf %68, %70 : vector<8x8xf32>
    %72 = vector.extract_strided_slice %8 {offsets = [0, 24], sizes = [8, 8], strides = [1, 1]} : vector<16x96xbf16> to vector<8x8xbf16>
    %73 = vector.extract_strided_slice %8 {offsets = [0, 56], sizes = [8, 8], strides = [1, 1]} : vector<16x96xbf16> to vector<8x8xbf16>
    %74 = vector.extract_strided_slice %8 {offsets = [0, 88], sizes = [8, 8], strides = [1, 1]} : vector<16x96xbf16> to vector<8x8xbf16>
    %cst_19 = arith.constant dense<0.000000e+00> : vector<8x8xf32>
    %75 = tpu.matmul %72, %73, %cst_19 {dimension_numbers = #tpu.dot_dimension_numbers<[1], [1], [0], [0], [0, 0, 1, 0], [], []>} : vector<8x8xbf16>, vector<8x8xbf16>, vector<8x8xf32> -> vector<8x8xf32>
    %76 = vector.broadcast %17 : vector<1x8xf32> to vector<8x8xf32>
    %77 = arith.addf %75, %76 : vector<8x8xf32>
    %cst_20 = arith.constant dense<0xFF800000> : vector<8xf32>
    %78 = vector.multi_reduction <maximumf>, %77, %cst_20 [1] : vector<8x8xf32> to vector<8xf32>
    %79 = vector.shape_cast %78 : vector<8xf32> to vector<8x1xf32>
    %80 = vector.broadcast %79 : vector<8x1xf32> to vector<8x8xf32>
    %81 = arith.subf %77, %80 : vector<8x8xf32>
    %82 = math.exp %81 : vector<8x8xf32>
    %cst_21 = arith.constant dense<0.000000e+00> : vector<8xf32>
    %83 = vector.multi_reduction <add>, %82, %cst_21 [1] : vector<8x8xf32> to vector<8xf32>
    %84 = vector.shape_cast %83 : vector<8xf32> to vector<8x1xf32>
    %85 = arith.truncf %82 : vector<8x8xf32> to vector<8x8xbf16>
    %cst_22 = arith.constant dense<0.000000e+00> : vector<8x8xf32>
    %86 = tpu.matmul %85, %74, %cst_22 {dimension_numbers = #tpu.dot_dimension_numbers<[1], [0], [0], [1], [0, 0, 1, 1], [], []>} : vector<8x8xbf16>, vector<8x8xbf16>, vector<8x8xf32> -> vector<8x8xf32>
    %87 = tpu.reciprocal %84 {approx = true} : vector<8x1xf32> -> vector<8x1xf32>
    %88 = vector.broadcast %87 : vector<8x1xf32> to vector<8x8xf32>
    %89 = arith.mulf %86, %88 : vector<8x8xf32>
    %90 = tpu.concatenate %35, %53, %71, %89 in 1 : vector<8x8xf32>, vector<8x8xf32>, vector<8x8xf32>, vector<8x8xf32> -> vector<8x32xf32>
    %c1_i32 = arith.constant 1 : i32
    %91 = arith.addi %0, %c1_i32 : i32
    %92 = arith.index_cast %91 : i32 to index
    %93 = memref.load %arg1[%92] : memref<2xi32, #tpu.memory_space<smem>>
    %94 = vector.broadcast %93 : i32 to vector<1x8xi32>
    %95 = arith.cmpi slt, %9, %94 : vector<1x8xi32>
    %cst_23 = arith.constant 0.000000e+00 : f32
    %cst_24 = arith.constant -1.000000e+09 : f32
    %96 = vector.broadcast %cst_23 : f32 to vector<1x8xf32>
    %97 = vector.broadcast %cst_24 : f32 to vector<1x8xf32>
    %98 = arith.select %95, %96, %97 : vector<1x8xi1>, vector<1x8xf32>
    %99 = vector.extract_strided_slice %8 {offsets = [8, 0], sizes = [8, 8], strides = [1, 1]} : vector<16x96xbf16> to vector<8x8xbf16>
    %100 = vector.extract_strided_slice %8 {offsets = [8, 32], sizes = [8, 8], strides = [1, 1]} : vector<16x96xbf16> to vector<8x8xbf16>
    %101 = vector.extract_strided_slice %8 {offsets = [8, 64], sizes = [8, 8], strides = [1, 1]} : vector<16x96xbf16> to vector<8x8xbf16>
    %cst_25 = arith.constant dense<0.000000e+00> : vector<8x8xf32>
    %102 = tpu.matmul %99, %100, %cst_25 {dimension_numbers = #tpu.dot_dimension_numbers<[1], [1], [0], [0], [0, 0, 1, 0], [], []>} : vector<8x8xbf16>, vector<8x8xbf16>, vector<8x8xf32> -> vector<8x8xf32>
    %103 = vector.broadcast %98 : vector<1x8xf32> to vector<8x8xf32>
    %104 = arith.addf %102, %103 : vector<8x8xf32>
    %cst_26 = arith.constant dense<0xFF800000> : vector<8xf32>
    %105 = vector.multi_reduction <maximumf>, %104, %cst_26 [1] : vector<8x8xf32> to vector<8xf32>
    %106 = vector.shape_cast %105 : vector<8xf32> to vector<8x1xf32>
    %107 = vector.broadcast %106 : vector<8x1xf32> to vector<8x8xf32>
    %108 = arith.subf %104, %107 : vector<8x8xf32>
    %109 = math.exp %108 : vector<8x8xf32>
    %cst_27 = arith.constant dense<0.000000e+00> : vector<8xf32>
    %110 = vector.multi_reduction <add>, %109, %cst_27 [1] : vector<8x8xf32> to vector<8xf32>
    %111 = vector.shape_cast %110 : vector<8xf32> to vector<8x1xf32>
    %112 = arith.truncf %109 : vector<8x8xf32> to vector<8x8xbf16>
    %cst_28 = arith.constant dense<0.000000e+00> : vector<8x8xf32>
    %113 = tpu.matmul %112, %101, %cst_28 {dimension_numbers = #tpu.dot_dimension_numbers<[1], [0], [0], [1], [0, 0, 1, 1], [], []>} : vector<8x8xbf16>, vector<8x8xbf16>, vector<8x8xf32> -> vector<8x8xf32>
    %114 = tpu.reciprocal %111 {approx = true} : vector<8x1xf32> -> vector<8x1xf32>
    %115 = vector.broadcast %114 : vector<8x1xf32> to vector<8x8xf32>
    %116 = arith.mulf %113, %115 : vector<8x8xf32>
    %117 = vector.extract_strided_slice %8 {offsets = [8, 8], sizes = [8, 8], strides = [1, 1]} : vector<16x96xbf16> to vector<8x8xbf16>
    %118 = vector.extract_strided_slice %8 {offsets = [8, 40], sizes = [8, 8], strides = [1, 1]} : vector<16x96xbf16> to vector<8x8xbf16>
    %119 = vector.extract_strided_slice %8 {offsets = [8, 72], sizes = [8, 8], strides = [1, 1]} : vector<16x96xbf16> to vector<8x8xbf16>
    %cst_29 = arith.constant dense<0.000000e+00> : vector<8x8xf32>
    %120 = tpu.matmul %117, %118, %cst_29 {dimension_numbers = #tpu.dot_dimension_numbers<[1], [1], [0], [0], [0, 0, 1, 0], [], []>} : vector<8x8xbf16>, vector<8x8xbf16>, vector<8x8xf32> -> vector<8x8xf32>
    %121 = vector.broadcast %98 : vector<1x8xf32> to vector<8x8xf32>
    %122 = arith.addf %120, %121 : vector<8x8xf32>
    %cst_30 = arith.constant dense<0xFF800000> : vector<8xf32>
    %123 = vector.multi_reduction <maximumf>, %122, %cst_30 [1] : vector<8x8xf32> to vector<8xf32>
    %124 = vector.shape_cast %123 : vector<8xf32> to vector<8x1xf32>
    %125 = vector.broadcast %124 : vector<8x1xf32> to vector<8x8xf32>
    %126 = arith.subf %122, %125 : vector<8x8xf32>
    %127 = math.exp %126 : vector<8x8xf32>
    %cst_31 = arith.constant dense<0.000000e+00> : vector<8xf32>
    %128 = vector.multi_reduction <add>, %127, %cst_31 [1] : vector<8x8xf32> to vector<8xf32>
    %129 = vector.shape_cast %128 : vector<8xf32> to vector<8x1xf32>
    %130 = arith.truncf %127 : vector<8x8xf32> to vector<8x8xbf16>
    %cst_32 = arith.constant dense<0.000000e+00> : vector<8x8xf32>
    %131 = tpu.matmul %130, %119, %cst_32 {dimension_numbers = #tpu.dot_dimension_numbers<[1], [0], [0], [1], [0, 0, 1, 1], [], []>} : vector<8x8xbf16>, vector<8x8xbf16>, vector<8x8xf32> -> vector<8x8xf32>
    %132 = tpu.reciprocal %129 {approx = true} : vector<8x1xf32> -> vector<8x1xf32>
    %133 = vector.broadcast %132 : vector<8x1xf32> to vector<8x8xf32>
    %134 = arith.mulf %131, %133 : vector<8x8xf32>
    %135 = vector.extract_strided_slice %8 {offsets = [8, 16], sizes = [8, 8], strides = [1, 1]} : vector<16x96xbf16> to vector<8x8xbf16>
    %136 = vector.extract_strided_slice %8 {offsets = [8, 48], sizes = [8, 8], strides = [1, 1]} : vector<16x96xbf16> to vector<8x8xbf16>
    %137 = vector.extract_strided_slice %8 {offsets = [8, 80], sizes = [8, 8], strides = [1, 1]} : vector<16x96xbf16> to vector<8x8xbf16>
    %cst_33 = arith.constant dense<0.000000e+00> : vector<8x8xf32>
    %138 = tpu.matmul %135, %136, %cst_33 {dimension_numbers = #tpu.dot_dimension_numbers<[1], [1], [0], [0], [0, 0, 1, 0], [], []>} : vector<8x8xbf16>, vector<8x8xbf16>, vector<8x8xf32> -> vector<8x8xf32>
    %139 = vector.broadcast %98 : vector<1x8xf32> to vector<8x8xf32>
    %140 = arith.addf %138, %139 : vector<8x8xf32>
    %cst_34 = arith.constant dense<0xFF800000> : vector<8xf32>
    %141 = vector.multi_reduction <maximumf>, %140, %cst_34 [1] : vector<8x8xf32> to vector<8xf32>
    %142 = vector.shape_cast %141 : vector<8xf32> to vector<8x1xf32>
    %143 = vector.broadcast %142 : vector<8x1xf32> to vector<8x8xf32>
    %144 = arith.subf %140, %143 : vector<8x8xf32>
    %145 = math.exp %144 : vector<8x8xf32>
    %cst_35 = arith.constant dense<0.000000e+00> : vector<8xf32>
    %146 = vector.multi_reduction <add>, %145, %cst_35 [1] : vector<8x8xf32> to vector<8xf32>
    %147 = vector.shape_cast %146 : vector<8xf32> to vector<8x1xf32>
    %148 = arith.truncf %145 : vector<8x8xf32> to vector<8x8xbf16>
    %cst_36 = arith.constant dense<0.000000e+00> : vector<8x8xf32>
    %149 = tpu.matmul %148, %137, %cst_36 {dimension_numbers = #tpu.dot_dimension_numbers<[1], [0], [0], [1], [0, 0, 1, 1], [], []>} : vector<8x8xbf16>, vector<8x8xbf16>, vector<8x8xf32> -> vector<8x8xf32>
    %150 = tpu.reciprocal %147 {approx = true} : vector<8x1xf32> -> vector<8x1xf32>
    %151 = vector.broadcast %150 : vector<8x1xf32> to vector<8x8xf32>
    %152 = arith.mulf %149, %151 : vector<8x8xf32>
    %153 = vector.extract_strided_slice %8 {offsets = [8, 24], sizes = [8, 8], strides = [1, 1]} : vector<16x96xbf16> to vector<8x8xbf16>
    %154 = vector.extract_strided_slice %8 {offsets = [8, 56], sizes = [8, 8], strides = [1, 1]} : vector<16x96xbf16> to vector<8x8xbf16>
    %155 = vector.extract_strided_slice %8 {offsets = [8, 88], sizes = [8, 8], strides = [1, 1]} : vector<16x96xbf16> to vector<8x8xbf16>
    %cst_37 = arith.constant dense<0.000000e+00> : vector<8x8xf32>
    %156 = tpu.matmul %153, %154, %cst_37 {dimension_numbers = #tpu.dot_dimension_numbers<[1], [1], [0], [0], [0, 0, 1, 0], [], []>} : vector<8x8xbf16>, vector<8x8xbf16>, vector<8x8xf32> -> vector<8x8xf32>
    %157 = vector.broadcast %98 : vector<1x8xf32> to vector<8x8xf32>
    %158 = arith.addf %156, %157 : vector<8x8xf32>
    %cst_38 = arith.constant dense<0xFF800000> : vector<8xf32>
    %159 = vector.multi_reduction <maximumf>, %158, %cst_38 [1] : vector<8x8xf32> to vector<8xf32>
    %160 = vector.shape_cast %159 : vector<8xf32> to vector<8x1xf32>
    %161 = vector.broadcast %160 : vector<8x1xf32> to vector<8x8xf32>
    %162 = arith.subf %158, %161 : vector<8x8xf32>
    %163 = math.exp %162 : vector<8x8xf32>
    %cst_39 = arith.constant dense<0.000000e+00> : vector<8xf32>
    %164 = vector.multi_reduction <add>, %163, %cst_39 [1] : vector<8x8xf32> to vector<8xf32>
    %165 = vector.shape_cast %164 : vector<8xf32> to vector<8x1xf32>
    %166 = arith.truncf %163 : vector<8x8xf32> to vector<8x8xbf16>
    %cst_40 = arith.constant dense<0.000000e+00> : vector<8x8xf32>
    %167 = tpu.matmul %166, %155, %cst_40 {dimension_numbers = #tpu.dot_dimension_numbers<[1], [0], [0], [1], [0, 0, 1, 1], [], []>} : vector<8x8xbf16>, vector<8x8xbf16>, vector<8x8xf32> -> vector<8x8xf32>
    %168 = tpu.reciprocal %165 {approx = true} : vector<8x1xf32> -> vector<8x1xf32>
    %169 = vector.broadcast %168 : vector<8x1xf32> to vector<8x8xf32>
    %170 = arith.mulf %167, %169 : vector<8x8xf32>
    %171 = tpu.concatenate %116, %134, %152, %170 in 1 : vector<8x8xf32>, vector<8x8xf32>, vector<8x8xf32>, vector<8x8xf32> -> vector<8x32xf32>
    %172 = tpu.concatenate %90, %171 in 0 : vector<8x32xf32>, vector<8x32xf32> -> vector<16x32xf32>
    %173 = arith.truncf %172 : vector<16x32xf32> to vector<16x32xbf16>
    %c0_41 = arith.constant 0 : index
    %c0_42 = arith.constant 0 : index
    %174 = vector.load %arg4[%c0_41, %c0_42] : memref<32x32xbf16, #tpu.memory_space<vmem>>, vector<32x32xbf16>
    %cst_43 = arith.constant dense<0.000000e+00> : vector<16x32xf32>
    %175 = tpu.matmul %173, %174, %cst_43 {dimension_numbers = #tpu.dot_dimension_numbers<[1], [0], [0], [1], [0, 0, 1, 1], [], []>} : vector<16x32xbf16>, vector<32x32xbf16>, vector<16x32xf32> -> vector<16x32xf32>
    %c1 = arith.constant 1 : index
    %c0_44 = arith.constant 0 : index
    %176 = vector.load %arg7[%c1, %c0_44] : memref<8x128xf32, #tpu.memory_space<vmem>>, vector<1x32xf32>
    %177 = vector.broadcast %176 : vector<1x32xf32> to vector<16x32xf32>
    %178 = arith.addf %175, %177 : vector<16x32xf32>
    %179 = arith.addf %178, %1 : vector<16x32xf32>
    %cst_45 = arith.constant dense<0.000000e+00> : vector<16xf32>
    %180 = vector.multi_reduction <add>, %179, %cst_45 [1] : vector<16x32xf32> to vector<16xf32>
    %181 = vector.shape_cast %180 : vector<16xf32> to vector<16x1xf32>
    %cst_46 = arith.constant 3.200000e+01 : f32
    %182 = vector.broadcast %cst_46 : f32 to vector<16x1xf32>
    %183 = arith.divf %181, %182 : vector<16x1xf32>
    %184 = vector.broadcast %183 : vector<16x1xf32> to vector<16x32xf32>
    %185 = arith.subf %179, %184 : vector<16x32xf32>
    %186 = arith.mulf %185, %185 : vector<16x32xf32>
    %cst_47 = arith.constant dense<0.000000e+00> : vector<16xf32>
    %187 = vector.multi_reduction <add>, %186, %cst_47 [1] : vector<16x32xf32> to vector<16xf32>
    %188 = vector.shape_cast %187 : vector<16xf32> to vector<16x1xf32>
    %cst_48 = arith.constant 3.200000e+01 : f32
    %189 = vector.broadcast %cst_48 : f32 to vector<16x1xf32>
    %190 = arith.divf %188, %189 : vector<16x1xf32>
    %191 = vector.broadcast %183 : vector<16x1xf32> to vector<16x32xf32>
    %192 = arith.subf %179, %191 : vector<16x32xf32>
    %cst_49 = arith.constant 9.99999974E-6 : f32
    %193 = vector.broadcast %cst_49 : f32 to vector<16x1xf32>
    %194 = arith.addf %190, %193 : vector<16x1xf32>
    %195 = math.rsqrt %194 : vector<16x1xf32>
    %196 = vector.broadcast %195 : vector<16x1xf32> to vector<16x32xf32>
    %197 = arith.mulf %192, %196 : vector<16x32xf32>
    %c2 = arith.constant 2 : index
    %c0_50 = arith.constant 0 : index
    %198 = vector.load %arg7[%c2, %c0_50] : memref<8x128xf32, #tpu.memory_space<vmem>>, vector<1x32xf32>
    %199 = vector.broadcast %198 : vector<1x32xf32> to vector<16x32xf32>
    %200 = arith.mulf %197, %199 : vector<16x32xf32>
    %c3 = arith.constant 3 : index
    %c0_51 = arith.constant 0 : index
    %201 = vector.load %arg7[%c3, %c0_51] : memref<8x128xf32, #tpu.memory_space<vmem>>, vector<1x32xf32>
    %202 = vector.broadcast %201 : vector<1x32xf32> to vector<16x32xf32>
    %203 = arith.addf %200, %202 : vector<16x32xf32>
    %204 = arith.truncf %203 : vector<16x32xf32> to vector<16x32xbf16>
    %c0_52 = arith.constant 0 : index
    %c0_53 = arith.constant 0 : index
    %205 = vector.load %arg5[%c0_52, %c0_53] : memref<32x64xbf16, #tpu.memory_space<vmem>>, vector<32x64xbf16>
    %cst_54 = arith.constant dense<0.000000e+00> : vector<16x64xf32>
    %206 = tpu.matmul %204, %205, %cst_54 {dimension_numbers = #tpu.dot_dimension_numbers<[1], [0], [0], [1], [0, 0, 1, 1], [], []>} : vector<16x32xbf16>, vector<32x64xbf16>, vector<16x64xf32> -> vector<16x64xf32>
    %c4 = arith.constant 4 : index
    %c0_55 = arith.constant 0 : index
    %207 = vector.load %arg7[%c4, %c0_55] : memref<8x128xf32, #tpu.memory_space<vmem>>, vector<1x64xf32>
    %208 = vector.broadcast %207 : vector<1x64xf32> to vector<16x64xf32>
    %209 = arith.addf %206, %208 : vector<16x64xf32>
    %210 = arith.truncf %209 : vector<16x64xf32> to vector<16x64xbf16>
    %c0_56 = arith.constant 0 : index
    %c0_57 = arith.constant 0 : index
    %211 = vector.load %arg6[%c0_56, %c0_57] : memref<64x32xbf16, #tpu.memory_space<vmem>>, vector<64x32xbf16>
    %cst_58 = arith.constant dense<0.000000e+00> : vector<16x32xf32>
    %212 = tpu.matmul %210, %211, %cst_58 {dimension_numbers = #tpu.dot_dimension_numbers<[1], [0], [0], [1], [0, 0, 1, 1], [], []>} : vector<16x64xbf16>, vector<64x32xbf16>, vector<16x32xf32> -> vector<16x32xf32>
    %c5 = arith.constant 5 : index
    %c0_59 = arith.constant 0 : index
    %213 = vector.load %arg7[%c5, %c0_59] : memref<8x128xf32, #tpu.memory_space<vmem>>, vector<1x32xf32>
    %214 = vector.broadcast %213 : vector<1x32xf32> to vector<16x32xf32>
    %215 = arith.addf %212, %214 : vector<16x32xf32>
    %cst_60 = arith.constant 0.000000e+00 : f32
    %216 = vector.broadcast %cst_60 : f32 to vector<16x32xf32>
    %217 = arith.maximumf %215, %216 : vector<16x32xf32>
    %218 = arith.addf %217, %203 : vector<16x32xf32>
    %cst_61 = arith.constant dense<0.000000e+00> : vector<16xf32>
    %219 = vector.multi_reduction <add>, %218, %cst_61 [1] : vector<16x32xf32> to vector<16xf32>
    %220 = vector.shape_cast %219 : vector<16xf32> to vector<16x1xf32>
    %cst_62 = arith.constant 3.200000e+01 : f32
    %221 = vector.broadcast %cst_62 : f32 to vector<16x1xf32>
    %222 = arith.divf %220, %221 : vector<16x1xf32>
    %223 = vector.broadcast %222 : vector<16x1xf32> to vector<16x32xf32>
    %224 = arith.subf %218, %223 : vector<16x32xf32>
    %225 = arith.mulf %224, %224 : vector<16x32xf32>
    %cst_63 = arith.constant dense<0.000000e+00> : vector<16xf32>
    %226 = vector.multi_reduction <add>, %225, %cst_63 [1] : vector<16x32xf32> to vector<16xf32>
    %227 = vector.shape_cast %226 : vector<16xf32> to vector<16x1xf32>
    %cst_64 = arith.constant 3.200000e+01 : f32
    %228 = vector.broadcast %cst_64 : f32 to vector<16x1xf32>
    %229 = arith.divf %227, %228 : vector<16x1xf32>
    %230 = vector.broadcast %222 : vector<16x1xf32> to vector<16x32xf32>
    %231 = arith.subf %218, %230 : vector<16x32xf32>
    %cst_65 = arith.constant 9.99999974E-6 : f32
    %232 = vector.broadcast %cst_65 : f32 to vector<16x1xf32>
    %233 = arith.addf %229, %232 : vector<16x1xf32>
    %234 = math.rsqrt %233 : vector<16x1xf32>
    %235 = vector.broadcast %234 : vector<16x1xf32> to vector<16x32xf32>
    %236 = arith.mulf %231, %235 : vector<16x32xf32>
    %c6 = arith.constant 6 : index
    %c0_66 = arith.constant 0 : index
    %237 = vector.load %arg7[%c6, %c0_66] : memref<8x128xf32, #tpu.memory_space<vmem>>, vector<1x32xf32>
    %238 = vector.broadcast %237 : vector<1x32xf32> to vector<16x32xf32>
    %239 = arith.mulf %236, %238 : vector<16x32xf32>
    %c7 = arith.constant 7 : index
    %c0_67 = arith.constant 0 : index
    %240 = vector.load %arg7[%c7, %c0_67] : memref<8x128xf32, #tpu.memory_space<vmem>>, vector<1x32xf32>
    %241 = vector.broadcast %240 : vector<1x32xf32> to vector<16x32xf32>
    %242 = arith.addf %239, %241 : vector<16x32xf32>
    %c0_68 = arith.constant 0 : index
    %c0_69 = arith.constant 0 : index
    %243 = vector.load %arg8[%c0_68, %c0_69] : memref<16x32xf32, #tpu.memory_space<vmem>>, vector<16x32xf32>
    tpu.vector_store %arg8[%c0_68, %c0_69], %242 {strides = array<i32>} : memref<16x32xf32, #tpu.memory_space<vmem>>, vector<16x32xf32>,
    return
  }
  func.func @transform_0(%arg0: i32, %arg1: memref<2xi32, #tpu.memory_space<smem>>) -> (i32, i32) {
    %c0_i32 = arith.constant 0 : i32
    %c0_i32_0 = arith.constant 0 : i32
    return %arg0, %c0_i32 : i32, i32
  }
  func.func @transform_1(%arg0: i32, %arg1: memref<2xi32, #tpu.memory_space<smem>>) -> (i32, i32) {
    %c0_i32 = arith.constant 0 : i32
    %c0_i32_0 = arith.constant 0 : i32
    %c0_i32_1 = arith.constant 0 : i32
    return %c0_i32, %c0_i32_0 : i32, i32
  }
  func.func @transform_2(%arg0: i32, %arg1: memref<2xi32, #tpu.memory_space<smem>>) -> (i32, i32) {
    %c0_i32 = arith.constant 0 : i32
    %c0_i32_0 = arith.constant 0 : i32
    %c0_i32_1 = arith.constant 0 : i32
    return %c0_i32, %c0_i32_0 : i32, i32
  }
  func.func @transform_3(%arg0: i32, %arg1: memref<2xi32, #tpu.memory_space<smem>>) -> (i32, i32) {
    %c0_i32 = arith.constant 0 : i32
    %c0_i32_0 = arith.constant 0 : i32
    %c0_i32_1 = arith.constant 0 : i32
    return %c0_i32, %c0_i32_0 : i32, i32
  }
  func.func @transform_4(%arg0: i32, %arg1: memref<2xi32, #tpu.memory_space<smem>>) -> (i32, i32) {
    %c0_i32 = arith.constant 0 : i32
    %c0_i32_0 = arith.constant 0 : i32
    %c0_i32_1 = arith.constant 0 : i32
    return %c0_i32, %c0_i32_0 : i32, i32
  }
  func.func @transform_5(%arg0: i32, %arg1: memref<2xi32, #tpu.memory_space<smem>>) -> (i32, i32) {
    %c0_i32 = arith.constant 0 : i32
    %c0_i32_0 = arith.constant 0 : i32
    %c0_i32_1 = arith.constant 0 : i32
    return %c0_i32, %c0_i32_0 : i32, i32
  }
  func.func @transform_6(%arg0: i32, %arg1: memref<2xi32, #tpu.memory_space<smem>>) -> (i32, i32) {
    %c0_i32 = arith.constant 0 : i32
    %c0_i32_0 = arith.constant 0 : i32
    return %arg0, %c0_i32 : i32, i32
  }
}

</mosaic_0001>

<bundles_post_ra>
// kernel: tpu_custom_call.1
= control target key start
LH: loop header
LB: loop body
LE: loop exit
PB: predicated region body
PF: predicated region fallthrough
CT: control target
= control target key end

     0   :  { %s2098_s0 = inlined_call_operand.hbm [shape: s32[2], index: 0, kind: input, shape index: {}]   ;;  %s2099_s1 = inlined_call_operand.vmem [shape: f32[16,32], index: 1, kind: input, shape index: {}]   ;;  %s2100_s2 = inlined_call_operand.vmem [shape: bf16[32,96], index: 2, kind: input, shape index: {}]   ;;  %s2101_s3 = inlined_call_operand.vmem [shape: bf16[32,32], index: 3, kind: input, shape index: {}]   ;;  %s2102_s4 = inlined_call_operand.hbm [shape: bf16[32,64], index: 4, kind: input, shape index: {}]   ;;  %s2103_s5 = inlined_call_operand.vmem [shape: bf16[64,32], index: 5, kind: input, shape index: {}]   ;;  %s2104_s6 = inlined_call_operand.hbm [shape: f32[8,128], index: 6, kind: input, shape index: {}]   ;;  %s2105_s7 = inlined_call_operand.hbm [shape: f32[16,32], index: 7, kind: output, shape index: {}]  }
   0x1   :  { %s1677_s26 = scalar_lea.hbm %s2098_s0, 16 }
   0x2   :  { %p1678_p0 = scmp.ne.s32.totalorder %s2098_s0, %s1677_s26  ;;  %p1681_p1 = scmp.lt.u32.totalorder %s1677_s26, %s2098_s0 }
   0x4   :  { %p1683_p2 = pnand %p1681_p1, %p1678_p0 }
   0x6   :  { %1686 = shalt.err (!%p1683_p2)  }
   0x7   :  { %s1761_s8 = smov [#allocation3]  }
   0x8   :  { %13 = dma.hbm_to_smem %s2098_s0, 16, %s1761_s8, [#allocation2] }
   0x9   :  { %1753 = dma.done.wait [#allocation2], 16 }
   0xa   :  { %1754 = vsyncadd [#allocation2], 4294967280 }
   0xb   :  { %15 = sfence }
   0xc   :  { %16 = vsyncpa [#allocation5], 0 }
   0xd   :  { %17 = vsyncpa [#allocation8], 0 }
   0xe   :  { %18 = vsyncpa [#allocation6], 0  ;;  %s1762_s11 = smov [#allocation4]   ;;  %s1687_s15 = scalar_lea.hbm %s2102_s4, 256 }
   0xf   :  { %s30_s12 = sshll.u32 %s1762_s11, 4  ;;  %p1688_p3 = scmp.ne.s32.totalorder %s2102_s4, %s1687_s15  ;;  %s31_s12 = int_to_ptr.vmem [resolvable:$true] %s30_s12 }
  0x10   :  { %p1691_p4 = scmp.lt.u32.totalorder %s1687_s15, %s2102_s4 }
  0x12   :  { %p1693_p5 = pnand %p1691_p4, %p1688_p3 }
  0x14   :  { %1696 = shalt.err (!%p1693_p5)
}
  0x15   :  { %s1697_s0 = scalar_lea.vmem %s31_s12, 256  ;;  %p1702_p7 = scmp.lt.s32.totalorder %s31_s12, %s31_s12 }
  0x16   :  { %p1698_p6 = scmp.ne.s32.totalorder %s31_s12, %s1697_s0  ;;  %p1703_p8 = scmp.lt.s32.totalorder %s1697_s0, %s1697_s0 }
  0x18   :  { %p1704_p9 = por %p1703_p8, %p1702_p7 }
  0x1a   :  { %p1705_p10 = pnand %p1704_p9, %p1698_p6 }
  0x1c   :  { %1708 = shalt.err (!%p1705_p10)
}
  0x1d   :  { %s1763_s20 = smov 64   ;;  %s1764_s21 = smov 4  }
  0x1e   :  { %36 = dma.hbm_to_vmem [thread:$0]  %s2102_s4, 256, %s31_s12, [#allocation5], %s1763_s20, %s1763_s20, %s1764_s21  }
  0x1f   :  { %s1765_s24 = smov [#allocation7]   ;;  %s1709_s28 = scalar_lea.hbm %s2104_s6, 128 }
  0x20   :  { %s45_s25 = sshll.u32 %s1765_s24, 4  ;;  %p1710_p11 = scmp.ne.s32.totalorder %s2104_s6, %s1709_s28  ;;  %s46_s25 = int_to_ptr.vmem [resolvable:$true] %s45_s25 }
  0x21   :  { %p1713_p12 = scmp.lt.u32.totalorder %s1709_s28, %s2104_s6 }
  0x23   :  { %p1715_p13 = pnand %p1713_p12, %p1710_p11 }
  0x25   :  { %1718 = shalt.err (!%p1715_p13)
}
  0x26   :  { %s1719_s10 = scalar_lea.vmem %s46_s25, 128  ;;  %p1724_p1 = scmp.lt.s32.totalorder %s46_s25, %s46_s25 }
  0x27   :  { %p1720_p0 = scmp.ne.s32.totalorder %s46_s25, %s1719_s10  ;;  %p1725_p2 = scmp.lt.s32.totalorder %s1719_s10, %s1719_s10 }
  0x29   :  { %p1726_p3 = por %p1725_p2, %p1724_p1 }
  0x2b   :  { %p1727_p4 = pnand %p1726_p3, %p1720_p0 }
  0x2d   :  { %1730 = shalt.err (!%p1727_p4)
}
  0x2e   :  { %48 = dma.hbm_to_vmem [thread:$0]  %s2104_s6, 128, %s46_s25, [#allocation8]  }
  0x2f   :  { %1755 = dma.done.wait [#allocation5], 256  }
  0x30   :  { %1756 = vsyncadd [#allocation5], 4294967040 }
  0x31   :  { %1757 = dma.done.wait [#allocation8], 128  }
  0x32   :  { %1758 = vsyncadd [#allocation8], 4294967168  ;;  %v1766_v0 = vmov 0.0   ;;  %vm1767_vm0 = vmmov 0   ;;  %v1627_v1 = vld [vmem:[%s2100_s2] sm:$0xff]   ;;  %v1628_v2 = vld [vmem:[%s2100_s2 + $0x8] sm:$0xff]   ;;  %v127_v39 = vlaneseq }
  0x33   :  { %1457 = vmatprep.subr.bf16.mxu0 %v1766_v0  ;;  %1461 = vmatprep.mubr.msk.bf16.mxu0 %vm1767_vm0, %v1766_v0  ;;  %v1877_v3 = vld [vmem:[%s2099_s1] sm:$0xff]  ;;  %v1882_v4 = vld [vmem:[%s2099_s1 + $0x8] sm:$0xff]  ;;  %vm81_vm1 = vcmask 261120   ;;  %v1372_v6 = vld [vmem:[#allocation7] ss:$0 sm:$0xff]  ;;  %s1768_s1 = smov 120  }
  0x34   :  { %1465 = vmatprep.subr.bf16.mxu1 %v1766_v0  ;;  %1467 = vmatprep.mubr.msk.bf16.mxu1 %vm1767_vm0, %v1766_v0  ;;  %v59_v5 = vpack.c.bf16 %v1882_v4, %v1877_v3  ;;  %s1769_s2 = smov 96   ;;  %s1770_s19 = smov 80   ;;  %vm136_vm2 = vcmask 64512   ;;  %vm198_vm3 = vcmask 1043456   ;;  %v128_v40 = vand.u32 127, %v127_v39 }
  0x35   :  { %1458 = vmatpush3.bf16.msra.mxu0 %v1627_v1  ;;  %s1771_s0 = smov 88   ;;  %s1772_s21 = smov 72   ;;  %v1776_v42 = vmov -1e+09   ;;  %vm587_vm6 = vcmask 130048   ;;  %vm589_vm7 = vcmask 195584  }
  0x36   :  { %1459 = vmatprep.subr.bf16.mxu0 %v1766_v0  ;;  %s1773_s22 = smov 112   ;;  %s1774_s23 = smov 104   ;;  %vm1263_vm8 = vcmask 523264  }
  0x37   :  { %s1775_s24 = smov 56   ;;  %s129_s25 = sld [smem:[#allocation3]] }
  0x38   :  { %s1777_s26 = smov 48   ;;  %s1778_s27 = smov 40  }
  0x39   :  { %1460 = vmatpush3.bf16.msra.mxu0 %v1628_v2  ;;  %s1384_s28 = sld [smem:[#allocation3 + $0x1]]  ;;  %s1779_s30 = smov 8  }
  0x3a   :  { %1471 = vmatprep.subr.bf16.mxu0 %v1766_v0  ;;  %s1780_s10 = smov 16   ;;  %s1781_s4 = smov 24  }
  0x3c   :  { %1462 = vmatmul.mubr.msk.bf16.vlgmr.msra.gmra.mrb[0].mxu0 %vm81_vm1, %v59_v5 }
  0x3d   :  { %1473 = vmatprep.mubr.msk.bf16.mxu0 %vm1767_vm0, %v1766_v0  ;;  %v130_v41 = vstv %s129_s25 }
  0x3e   :  { %vm131_vm4 = vcmp.lt.s32.totalorder %v128_v40, %v130_v41 }
  0x3f   :  { %v132_v43 = vsel %vm131_vm4, 0.0, %v1776_v42 }
 0x10f   :  { %v119_v7 = vpop.f32.mrb[0].mxu0 }
 0x110   :  { %v1463_v8 = vpop.f32.mrb[1].mxu0  ;;  %v120_v10 = vadd.f32 %v1372_v6, %v119_v7 }
 0x111   :  { %v122_v9 = vpop.f32.mrb[2].mxu0 }
 0x112   :  { %v123_v11 = vadd.f32 %v1372_v6, %v122_v9  ;;  %v1464_v12 = vpop.f32.mrb[3].mxu0 }
 0x114   :  { %v1891_v13 = vpack.c.bf16 %v123_v11, %v120_v10 }
 0x116   :  { %244 = vrot.lane.b32.xlu1 %v1891_v13, %s1768_s1  ;;  %134 = vrot.lane.b32.xlu0 %v1891_v13, %s1769_s2  ;;  %v1900_v14 = vrot.slane %v1891_v13, 4 }
 0x11a   :  { %356 = vrot.lane.b32.xlu1 %v1891_v13, %s1770_s19  ;;  %246 = vrot.lane.b32.xlu0 %v1891_v13, %s1771_s0 }
 0x11e   :  { %466 = vrot.lane.b32.xlu1 %v1891_v13, %s1772_s21  ;;  %354 = vrot.lane.b32.xlu0 %v1891_v13, %s1773_s22 }
 0x122   :  { %464 = vrot.lane.b32.xlu0 %v1891_v13, %s1774_s23  ;;  %597 = vrot.lane.b32.xlu1 %v1900_v14, %s1769_s2 }
 0x126   :  { %707 = vrot.lane.b32.xlu0 %v1900_v14, %s1771_s0  ;;  %705 = vrot.lane.b32.xlu1 %v1900_v14, %s1768_s1 }
 0x12a   :  { %817 = vrot.lane.b32.xlu0 %v1900_v14, %s1770_s19  ;;  %815 = vrot.lane.b32.xlu1 %v1900_v14, %s1773_s22 }
 0x12e   :  { %927 = vrot.lane.b32.xlu0 %v1900_v14, %s1772_s21  ;;  %925 = vrot.lane.b32.xlu1 %v1900_v14, %s1774_s23 }
 0x132   :  { %304 = vrot.lane.b32.xlu0 %v1891_v13, %s1775_s24  ;;  %193 = vrot.lane.b32.xlu1 %v1891_v13, %s1763_s20 }
 0x188   :  { %v245_v15 = vpop.permute.xlu1 %244  ;;  %v135_v16 = vpop.permute.xlu0 %134 }
 0x189   :  { %v141_v17 = vsel %vm136_vm2, %v135_v16, 0  ;;  %v593_v16 = vstv %s1384_s28 }
 0x18a   :  { %1466 = vmatpush3.bf16.xpose.msra.mxu1 %v141_v17  ;;  %vm594_vm5 = vcmp.lt.s32.totalorder %v128_v40, %v593_v16 }
 0x18b   :  { %1477 = vmatprep.subr.bf16.mxu1 %v1766_v0 }
 0x18c   :  { %v357_v18 = vpop.permute.xlu1 %356  ;;  %v247_v19 = vpop.permute.xlu0 %246 }
 0x18d   :  { %v252_v21 = vsel %vm136_vm2, %v247_v19, 0  ;;  %v362_v24 = vsel %vm136_vm2, %v357_v18, 0 }
 0x190   :  { %v467_v20 = vpop.permute.xlu1 %466  ;;  %v355_v26 = vpop.permute.xlu0 %354 }
 0x191   :  { %1468 = vmatmul.mubr.msk.bf16.vlgmr.msra.gmra.mrb[0].mxu1 %vm136_vm2, %v1891_v13  ;;  %v472_v28 = vsel %vm136_vm2, %v467_v20, 0 }
 0x192   :  { %1478 = vmatpush3.bf16.xpose.msra.mxu1 %v252_v21  ;;  %1479 = vmatprep.mubr.msk.bf16.mxu1 %vm1767_vm0, %v1766_v0  ;;  %v595_v21 = vsel %vm594_vm5, 0.0, %v1776_v42 }
 0x193   :  { %1489 = vmatprep.subr.bf16.mxu1 %v1766_v0 }
 0x194   :  { %v598_v22 = vpop.permute.xlu1 %597  ;;  %v465_v31 = vpop.permute.xlu0 %464 }
 0x195   :  { %v603_v32 = vsel %vm136_vm2, %v598_v22, 0 }
 0x198   :  { %v706_v23 = vpop.permute.xlu1 %705  ;;  %v708_v33 = vpop.permute.xlu0 %707 }
 0x199   :  { %1480 = vmatmul.mubr.msk.bf16.vlgmr.msra.gmra.mrb[4].mxu1 %vm136_vm2, %v245_v15  ;;  %v713_v34 = vsel %vm136_vm2, %v708_v33, 0 }
 0x19a   :  { %1490 = vmatpush3.bf16.xpose.msra.mxu1 %v362_v24  ;;  %1491 = vmatprep.mubr.msk.bf16.mxu1 %vm1767_vm0, %v1766_v0 }
 0x19b   :  { %1501 = vmatprep.subr.bf16.mxu1 %v1766_v0 }
 0x19c   :  { %v816_v25 = vpop.permute.xlu1 %815  ;;  %v818_v35 = vpop.permute.xlu0 %817 }
 0x19d   :  { %v823_v36 = vsel %vm136_vm2, %v818_v35, 0 }
 0x1a0   :  { %v926_v27 = vpop.permute.xlu1 %925  ;;  %v928_v37 = vpop.permute.xlu0 %927 }
 0x1a1   :  { %1492 = vmatmul.mubr.msk.bf16.vlgmr.msra.gmra.mrb[8].mxu1 %vm136_vm2, %v355_v26  ;;  %v933_v38 = vsel %vm136_vm2, %v928_v37, 0 }
 0x1a2   :  { %1502 = vmatpush3.bf16.xpose.msra.mxu1 %v472_v28  ;;  %1503 = vmatprep.mubr.msk.bf16.mxu1 %vm1767_vm0, %v1766_v0 }
 0x1a3   :  { %1513 = vmatprep.subr.bf16.mxu1 %v1766_v0 }
 0x1a4   :  { %v194_v29 = vpop.permute.xlu1 %193 }
 0x1a5   :  { %v200_v30 = vsel %vm198_vm3, %v194_v29, 0 }
 0x1a6   :  { %1472 = vmatpush3.bf16.msra.mxu0 %v200_v30 }
 0x1a7   :  { %1483 = vmatprep.subr.bf16.mxu0 %v1766_v0 }
 0x1a9   :  { %1504 = vmatmul.mubr.msk.bf16.vlgmr.msra.gmra.mrb[12].mxu1 %vm136_vm2, %v465_v31 }
 0x1aa   :  { %1514 = vmatpush3.bf16.xpose.msra.mxu1 %v603_v32  ;;  %1515 = vmatprep.mubr.msk.bf16.mxu1 %vm1767_vm0, %v1766_v0 }
 0x1ab   :  { %1525 = vmatprep.subr.bf16.mxu1 %v1766_v0 }
 0x1b1   :  { %1516 = vmatmul.mubr.msk.bf16.vlgmr.msra.gmra.mrb[16].mxu1 %vm136_vm2, %v1900_v14 }
 0x1b2   :  { %1526 = vmatpush3.bf16.xpose.msra.mxu1 %v713_v34  ;;  %1527 = vmatprep.mubr.msk.bf16.mxu1 %vm1767_vm0, %v1766_v0  ;;  %v305_v34 = vpop.permute.xlu0 %304 }
 0x1b3   :  { %1537 = vmatprep.subr.bf16.mxu1 %v1766_v0 }
 0x1b9   :  { %1528 = vmatmul.mubr.msk.bf16.vlgmr.msra.gmra.mrb[20].mxu1 %vm136_vm2, %v706_v23 }
 0x1ba   :  { %1538 = vmatpush3.bf16.xpose.msra.mxu1 %v823_v36  ;;  %1539 = vmatprep.mubr.msk.bf16.mxu1 %vm1767_vm0, %v1766_v0 }
 0x1bb   :  { %1549 = vmatprep.subr.bf16.mxu1 %v1766_v0 }
 0x1c1   :  { %1540 = vmatmul.mubr.msk.bf16.vlgmr.msra.gmra.mrb[24].mxu1 %vm136_vm2, %v816_v25 }
 0x1c2   :  { %1550 = vmatpush3.bf16.xpose.msra.mxu1 %v933_v38  ;;  %1551 = vmatprep.mubr.msk.bf16.mxu1 %vm1767_vm0, %v1766_v0 }
 0x1c3   :  { %1561 = vmatprep.subr.bf16.mxu1 %v1766_v0 }
 0x1c9   :  { %1552 = vmatmul.mubr.msk.bf16.vlgmr.msra.gmra.mrb[28].mxu1 %vm136_vm2, %v926_v27 }
 0x1ca   :  { %1565 = vmatprep.mubr.msk.bf16.mxu1 %vm1767_vm0, %v1766_v0 }
 0x264   :  { %v177_v44 = vpop.f32.mrb[0].mxu1 }
 0x265   :  { %v1958_v45 = vadd.f32 %v177_v44, %v132_v43  ;;  %v1469_v46 = vpop.f32.mrb[1].mxu1 }
 0x266   :  { %v180_v47 = vpop.f32.mrb[2].mxu1 }
 0x267   :  { %v1470_v48 = vpop.f32.mrb[3].mxu1  ;;  %v183_v49 = vsel %vm136_vm2, %v1958_v45, -inf }
 0x268   :  { %184 = vmax.xlane.f32.xlu0 %v183_v49 }
 0x26c   :  { %v288_v50 = vpop.f32.mrb[4].mxu1 }
 0x26d   :  { %v1962_v51 = vadd.f32 %v288_v50, %v132_v43  ;;  %v1481_v52 = vpop.f32.mrb[5].mxu1 }
 0x26e   :  { %v291_v53 = vpop.f32.mrb[6].mxu1 }
 0x26f   :  { %v1482_v54 = vpop.f32.mrb[7].mxu1  ;;  %v294_v55 = vsel %vm136_vm2, %v1962_v51, -inf }
 0x270   :  { %295 = vmax.xlane.f32.xlu1 %v294_v55 }
 0x274   :  { %v398_v56 = vpop.f32.mrb[8].mxu1 }
 0x275   :  { %v1493_v57 = vpop.f32.mrb[9].mxu1  ;;  %v399_v18 = vadd.f32 %v398_v56, %v132_v43 }
 0x276   :  { %v401_v58 = vpop.f32.mrb[10].mxu1 }
 0x277   :  { %v1494_v59 = vpop.f32.mrb[11].mxu1 }
 0x27c   :  { %v508_v60 = vpop.f32.mrb[12].mxu1 }
 0x27d   :  { %v1505_v61 = vpop.f32.mrb[13].mxu1  ;;  %v509_v19 = vadd.f32 %v508_v60, %v132_v43  ;;  %v310_v43 = vsel %vm198_vm3, %v305_v34, 0 }
 0x27e   :  { %v511_v62 = vpop.f32.mrb[14].mxu1  ;;  %414 = vrot.lane.b32.xlu0 %v1891_v13, %s1777_s26 }
 0x27f   :  { %v1506_v63 = vpop.f32.mrb[15].mxu1  ;;  %v514_v27 = vsel %vm136_vm2, %v509_v19, -inf }
 0x281   :  { %524 = vrot.lane.b32.xlu1 %v1891_v13, %s1778_s27  ;;  %v404_v13 = vsel %vm136_vm2, %v399_v18, -inf }
 0x284   :  { %v639_v1 = vpop.f32.mrb[16].mxu1 }
 0x285   :  { %v1517_v2 = vpop.f32.mrb[17].mxu1  ;;  %v640_v25 = vadd.f32 %v639_v1, %v595_v21 }
 0x286   :  { %v642_v5 = vpop.f32.mrb[18].mxu1 }
 0x287   :  { %v1518_v6 = vpop.f32.mrb[19].mxu1  ;;  %v645_v29 = vsel %vm136_vm2, %v640_v25, -inf }
 0x28c   :  { %v749_v7 = vpop.f32.mrb[20].mxu1 }
 0x28d   :  { %v1529_v8 = vpop.f32.mrb[21].mxu1  ;;  %v750_v26 = vadd.f32 %v749_v7, %v595_v21 }
 0x28e   :  { %v752_v9 = vpop.f32.mrb[22].mxu1 }
 0x28f   :  { %v1530_v10 = vpop.f32.mrb[23].mxu1  ;;  %v755_v30 = vsel %vm136_vm2, %v750_v26, -inf }
 0x294   :  { %v859_v11 = vpop.f32.mrb[24].mxu1 }
 0x295   :  { %v1541_v12 = vpop.f32.mrb[25].mxu1  ;;  %v860_v28 = vadd.f32 %v859_v11, %v595_v21 }
 0x296   :  { %v862_v15 = vpop.f32.mrb[26].mxu1 }
 0x297   :  { %v1542_v17 = vpop.f32.mrb[27].mxu1  ;;  %v865_v32 = vsel %vm136_vm2, %v860_v28, -inf }
 0x29c   :  { %v969_v20 = vpop.f32.mrb[28].mxu1 }
 0x29d   :  { %405 = vmax.xlane.f32.xlu0 %v404_v13  ;;  %v1553_v22 = vpop.f32.mrb[29].mxu1  ;;  %v1974_v31 = vadd.f32 %v969_v20, %v595_v21 }
 0x29e   :  { %v972_v23 = vpop.f32.mrb[30].mxu1 }
 0x29f   :  { %v1554_v24 = vpop.f32.mrb[31].mxu1  ;;  %v975_v33 = vsel %vm136_vm2, %v1974_v31, -inf }
 0x2a1   :  { %515 = vmax.xlane.f32.xlu0 %v514_v27 }
 0x2a5   :  { %646 = vmax.xlane.f32.xlu0 %v645_v29  ;;  %756 = vmax.xlane.f32.xlu1 %v755_v30 }
 0x2a9   :  { %866 = vmax.xlane.f32.xlu0 %v865_v32 }
 0x2ad   :  { %976 = vmax.xlane.f32.xlu0 %v975_v33 }
 0x2b6   :  { %765 = vrot.lane.b32.xlu1 %v1900_v14, %s1775_s24 }
 0x2ba   :  { %875 = vrot.lane.b32.xlu1 %v1900_v14, %s1777_s26 }
 0x2be   :  { %985 = vrot.lane.b32.xlu1 %v1900_v14, %s1778_s27 }
 0x2c3   :  { %655 = vrot.lane.b32.xlu0 %v1900_v14, %s1763_s20 }
 0x2f5   :  { %v185_v35 = vpop.xlane.xlu0 %184 }
 0x2f6   :  { %v186_v36 = vsub.f32 %v1958_v45, %v185_v35 }
 0x2f8   :  { %v187_v37 = vmul.f32 1.442695, %v186_v36 }
 0x2f9   :  { %v415_v44 = vpop.permute.xlu0 %414 }
 0x2fa   :  { %1637 = vpow2.f32 %v187_v37  ;;  %v420_v47 = vsel %vm198_vm3, %v415_v44, 0 }
 0x2fd   :  { %v296_v38 = vpop.xlane.xlu1 %295 }
 0x2fe   :  { %v297_v39 = vsub.f32 %v1962_v51, %v296_v38 }
 0x300   :  { %v298_v40 = vmul.f32 1.442695, %v297_v39 }
 0x301   :  { %v525_v51 = vpop.permute.xlu1 %524 }
 0x302   :  { %1639 = vpow2.f32 %v298_v40  ;;  %v530_v8 = vsel %vm198_vm3, %v525_v51, 0 }
 0x304   :  { %v1638_v41 = vpop.eup %1637 }
 0x305   :  { %v192_v42 = vpack.c.bf16 %v1638_v41, %v1638_v41  ;;  %v189_v16 = vsel %vm136_vm2, %v1638_v41, 0.0 }
 0x307   :  { %1474 = vmatmul.mubr.msk.bf16.vlgmr.msra.gmra.mrb[4].mxu0 %vm136_vm2, %v192_v42 }
 0x308   :  { %1484 = vmatpush3.bf16.msra.mxu0 %v310_v43  ;;  %1485 = vmatprep.mubr.msk.bf16.mxu0 %vm1767_vm0, %v1766_v0 }
 0x309   :  { %1495 = vmatprep.subr.bf16.mxu0 %v1766_v0 }
 0x30c   :  { %v1640_v14 = vpop.eup %1639 }
 0x30d   :  { %v300_v45 = vsel %vm136_vm2, %v1640_v14, 0.0  ;;  %v303_v46 = vpack.c.bf16 %v1640_v14, %v1640_v14 }
 0x30e   :  { %301 = vadd.xlane.f32.xlu1 %v300_v45 }
 0x30f   :  { %1486 = vmatmul.mubr.msk.bf16.vlgmr.msra.gmra.mrb[8].mxu0 %vm136_vm2, %v303_v46 }
 0x310   :  { %1496 = vmatpush3.bf16.msra.mxu0 %v420_v47  ;;  %1497 = vmatprep.mubr.msk.bf16.mxu0 %vm1767_vm0, %v1766_v0 }
 0x311   :  { %1507 = vmatprep.subr.bf16.mxu0 %v1766_v0 }
 0x32a   :  { %v406_v48 = vpop.xlane.xlu0 %405 }
 0x32b   :  { %v407_v49 = vsub.f32 %v399_v18, %v406_v48 }
 0x32d   :  { %v408_v50 = vmul.f32 1.442695, %v407_v49 }
 0x32e   :  { %v516_v52 = vpop.xlane.xlu0 %515 }
 0x32f   :  { %1641 = vpow2.f32 %v408_v50  ;;  %v517_v53 = vsub.f32 %v509_v19, %v516_v52 }
 0x331   :  { %v518_v54 = vmul.f32 1.442695, %v517_v53 }
 0x332   :  { %v647_v55 = vpop.xlane.xlu0 %646  ;;  %v757_v56 = vpop.xlane.xlu1 %756 }
 0x333   :  { %1643 = vpow2.f32 %v518_v54  ;;  %v758_v57 = vsub.f32 %v750_v26, %v757_v56  ;;  %v648_v58 = vsub.f32 %v640_v25, %v647_v55 }
 0x335   :  { %v759_v59 = vmul.f32 1.442695, %v758_v57  ;;  %v649_v63 = vmul.f32 1.442695, %v648_v58 }
 0x336   :  { %v867_v60 = vpop.xlane.xlu0 %866  ;;  %v766_v23 = vpop.permute.xlu1 %765 }
 0x337   :  { %v868_v61 = vsub.f32 %v860_v28, %v867_v60  ;;  %1645 = vpow2.f32 %v759_v59  ;;  %v771_v26 = vsel %vm198_vm3, %v766_v23, 0 }
 0x339   :  { %v1642_v62 = vpop.eup %1641  ;;  %v869_v1 = vmul.f32 1.442695, %v868_v61 }
 0x33a   :  { %v977_v2 = vpop.xlane.xlu0 %976  ;;  %v410_v5 = vsel %vm136_vm2, %v1642_v62, 0.0  ;;  %v413_v6 = vpack.c.bf16 %v1642_v62, %v1642_v62  ;;  %v876_v28 = vpop.permute.xlu1 %875 }
 0x33b   :  { %1647 = vpow2.f32 %v869_v1  ;;  %v978_v7 = vsub.f32 %v1974_v31, %v977_v2  ;;  %411 = vadd.xlane.f32.xlu1 %v410_v5  ;;  %v881_v30 = vsel %vm198_vm3, %v876_v28, 0  ;;  %v1629_v5 = vld [vmem:[%s2101_s3] sm:$0xff]  }
 0x33c   :  { %1498 = vmatmul.mubr.msk.bf16.vlgmr.msra.gmra.mrb[12].mxu0 %vm136_vm2, %v413_v6  ;;  %1649 = vpow2.f32 %v649_v63  ;;  %1562 = vmatpush3.bf16.msra.mxu1 %v1629_v5 }
 0x33d   :  { %v1644_v9 = vpop.eup %1643  ;;  %v979_v10 = vmul.f32 1.442695, %v978_v7  ;;  %1508 = vmatpush3.bf16.msra.mxu0 %v530_v8  ;;  %1509 = vmatprep.mubr.msk.bf16.mxu0 %vm1767_vm0, %v1766_v0 }
 0x33e   :  { %v520_v11 = vsel %vm136_vm2, %v1644_v9, 0.0  ;;  %1519 = vmatprep.subr.bf16.mxu0 %v1766_v0  ;;  %v656_v12 = vpop.permute.xlu0 %655  ;;  %v523_v17 = vpack.c.bf16 %v1644_v9, %v1644_v9  ;;  %v986_v31 = vpop.permute.xlu1 %985  ;;  %1563 = vmatprep.subr.bf16.mxu1 %v1766_v0 }
 0x33f   :  { %1651 = vpow2.f32 %v979_v10  ;;  %521 = vadd.xlane.f32.xlu1 %v520_v11  ;;  %v661_v19 = vsel %vm198_vm3, %v656_v12, 0  ;;  %v991_v33 = vsel %vm198_vm3, %v986_v31, 0 }
 0x341   :  { %v1646_v15 = vpop.eup %1645 }
 0x342   :  { %v761_v18 = vsel %vm136_vm2, %v1646_v15, 0.0  ;;  %v764_v29 = vpack.c.bf16 %v1646_v15, %v1646_v15 }
 0x343   :  { %190 = vadd.xlane.f32.xlu1 %v189_v16  ;;  %762 = vadd.xlane.f32.xlu0 %v761_v18 }
 0x344   :  { %1510 = vmatmul.mubr.msk.bf16.vlgmr.msra.gmra.mrb[16].mxu0 %vm136_vm2, %v523_v17  ;;  %v1630_v17 = vld [vmem:[%s2101_s3 + $0x8] sm:$0xff]  }
 0x345   :  { %v1648_v20 = vpop.eup %1647  ;;  %1520 = vmatpush3.bf16.msra.mxu0 %v661_v19  ;;  %1521 = vmatprep.mubr.msk.bf16.mxu0 %vm1767_vm0, %v1766_v0 }
 0x346   :  { %v871_v13 = vsel %vm136_vm2, %v1648_v20, 0.0  ;;  %1531 = vmatprep.subr.bf16.mxu0 %v1766_v0  ;;  %v1650_v21 = vpop.eup %1649  ;;  %v874_v32 = vpack.c.bf16 %v1648_v20, %v1648_v20  ;;  %1564 = vmatpush3.bf16.msra.mxu1 %v1630_v17 }
 0x347   :  { %872 = vadd.xlane.f32.xlu0 %v871_v13  ;;  %v654_v25 = vpack.c.bf16 %v1650_v21, %v1650_v21  ;;  %v651_v27 = vsel %vm136_vm2, %v1650_v21, 0.0  ;;  %1577 = vmatprep.subr.bf16.mxu1 %v1766_v0 }
 0x349   :  { %v1652_v22 = vpop.eup %1651 }
 0x34a   :  { %v981_v24 = vsel %vm136_vm2, %v1652_v22, 0.0  ;;  %v984_v34 = vpack.c.bf16 %v1652_v22, %v1652_v22 }
 0x34b   :  { %982 = vadd.xlane.f32.xlu0 %v981_v24 }
 0x34c   :  { %1522 = vmatmul.mubr.msk.bf16.vlgmr.msra.gmra.mrb[20].mxu0 %vm136_vm2, %v654_v25 }
 0x34d   :  { %1532 = vmatpush3.bf16.msra.mxu0 %v771_v26  ;;  %1533 = vmatprep.mubr.msk.bf16.mxu0 %vm1767_vm0, %v1766_v0 }
 0x34e   :  { %1543 = vmatprep.subr.bf16.mxu0 %v1766_v0 }
 0x34f   :  { %652 = vadd.xlane.f32.xlu0 %v651_v27 }
 0x354   :  { %1534 = vmatmul.mubr.msk.bf16.vlgmr.msra.gmra.mrb[24].mxu0 %vm136_vm2, %v764_v29 }
 0x355   :  { %1544 = vmatpush3.bf16.msra.mxu0 %v881_v30  ;;  %1545 = vmatprep.mubr.msk.bf16.mxu0 %vm1767_vm0, %v1766_v0 }
 0x356   :  { %1555 = vmatprep.subr.bf16.mxu0 %v1766_v0 }
 0x35c   :  { %1546 = vmatmul.mubr.msk.bf16.vlgmr.msra.gmra.mrb[28].mxu0 %vm136_vm2, %v874_v32 }
 0x35d   :  { %1556 = vmatpush3.bf16.msra.mxu0 %v991_v33  ;;  %1557 = vmatprep.mubr.msk.bf16.mxu0 %vm1767_vm0, %v1766_v0 }
 0x35e   :  { %1569 = vmatprep.subr.bf16.mxu0 %v1766_v0 }
 0x364   :  { %1558 = vmatmul.mubr.msk.bf16.vlgmr.msra.gmra.mrb[32].mxu0 %vm136_vm2, %v984_v34 }
 0x365   :  { %1573 = vmatprep.mubr.msk.bf16.mxu0 %vm1767_vm0, %v1766_v0 }
 0x39b   :  { %v302_v48 = vpop.xlane.xlu1 %301 }
 0x39c   :  { %1653 = vrcp.f32 %v302_v48 }
 0x3a6   :  { %v1654_v58 = vpop.eup %1653 }
 0x3c8   :  { %v412_v54 = vpop.xlane.xlu1 %411 }
 0x3cc   :  { %v522_v1 = vpop.xlane.xlu1 %521 }
 0x3d0   :  { %v763_v50 = vpop.xlane.xlu0 %762  ;;  %v191_v29 = vpop.xlane.xlu1 %190 }
 0x3d1   :  { %1655 = vrcp.f32 %v763_v50 }
 0x3d2   :  { %1657 = vrcp.f32 %v412_v54 }
 0x3d4   :  { %v873_v56 = vpop.xlane.xlu0 %872 }
 0x3d5   :  { %1659 = vrcp.f32 %v873_v56 }
 0x3d6   :  { %1661 = vrcp.f32 %v522_v1 }
 0x3d8   :  { %v983_v6 = vpop.xlane.xlu0 %982 }
 0x3d9   :  { %1663 = vrcp.f32 %v983_v6 }
 0x3da   :  { %v2036_v35 = vpop.f32.mrb[4].mxu0  ;;  %1665 = vrcp.f32 %v191_v29 }
 0x3db   :  { %v1475_v36 = vpop.f32.mrb[5].mxu0  ;;  %v1656_v59 = vpop.eup %1655 }
 0x3dc   :  { %v239_v37 = vpop.f32.mrb[6].mxu0  ;;  %v1658_v9 = vpop.eup %1657 }
 0x3dd   :  { %v1476_v38 = vpop.f32.mrb[7].mxu0  ;;  %v653_v30 = vpop.xlane.xlu0 %652 }
 0x3de   :  { %1667 = vrcp.f32 %v653_v30  ;;  %v1635_v30 = vld [vmem:[%s2103_s5 + $0x10] sm:$0xff]  }
 0x3df   :  { %v1660_v10 = vpop.eup %1659 }
 0x3e0   :  { %v1662_v13 = vpop.eup %1661 }
 0x3e2   :  { %v346_v39 = vpop.f32.mrb[8].mxu0 }
 0x3e3   :  { %v1487_v40 = vpop.f32.mrb[9].mxu0  ;;  %v353_v61 = vmul.f32 %v1654_v58, %v346_v39  ;;  %v1664_v21 = vpop.eup %1663 }
 0x3e4   :  { %v349_v41 = vpop.f32.mrb[10].mxu0  ;;  %v1666_v33 = vpop.eup %1665 }
 0x3e5   :  { %v1488_v42 = vpop.f32.mrb[11].mxu0  ;;  %v243_v40 = vmul.f32 %v1666_v33, %v2036_v35  ;;  %v1393_v35 = vld [vmem:[#allocation7 + $0x1] ss:$0 sm:$0xff] }
 0x3e8   :  { %v1668_v37 = vpop.eup %1667 }
 0x40f   :  { %v456_v43 = vpop.f32.mrb[12].mxu0 }
 0x410   :  { %v1499_v14 = vpop.f32.mrb[13].mxu0  ;;  %v463_v12 = vmul.f32 %v1658_v9, %v456_v43  ;;  %v1631_v9 = vld [vmem:[#allocation4] sm:$0xff]  }
 0x411   :  { %v459_v44 = vpop.f32.mrb[14].mxu0  ;;  %1570 = vmatpush3.bf16.msra.mxu0 %v1631_v9  ;;  %v1410_v9 = vld [vmem:[#allocation7 + $0x7] ss:$0 sm:$0xff] }
 0x412   :  { %v1500_v45 = vpop.f32.mrb[15].mxu0  ;;  %1571 = vmatprep.subr.bf16.mxu0 %v1766_v0 }
 0x417   :  { %v566_v46 = vpop.f32.mrb[16].mxu0 }
 0x418   :  { %v1511_v47 = vpop.f32.mrb[17].mxu0  ;;  %v573_v23 = vmul.f32 %v1662_v13, %v566_v46  ;;  %v1397_v13 = vld [vmem:[#allocation7 + $0x2] ss:$0 sm:$0xff] }
 0x419   :  { %v569_v49 = vpop.f32.mrb[18].mxu0 }
 0x41a   :  { %v1512_v51 = vpop.f32.mrb[19].mxu0 }
 0x41f   :  { %v2038_v52 = vpop.f32.mrb[20].mxu0 }
 0x420   :  { %v1523_v53 = vpop.f32.mrb[21].mxu0  ;;  %v704_v41 = vmul.f32 %v1668_v37, %v2038_v52 }
 0x421   :  { %v700_v55 = vpop.f32.mrb[22].mxu0 }
 0x422   :  { %v1524_v57 = vpop.f32.mrb[23].mxu0 }
 0x427   :  { %v807_v60 = vpop.f32.mrb[24].mxu0 }
 0x428   :  { %v814_v62 = vmul.f32 %v1656_v59, %v807_v60  ;;  %v1535_v63 = vpop.f32.mrb[25].mxu0 }
 0x429   :  { %v810_v2 = vpop.f32.mrb[26].mxu0 }
 0x42a   :  { %v1612_v7 = vpack.i.bf16 %v814_v62, %v353_v61  ;;  %v1536_v8 = vpop.f32.mrb[27].mxu0 }
 0x42c   :  { %1613 = vrot.lane.b32.xlu1 %v1612_v7, %s1779_s30 }
 0x42f   :  { %v917_v11 = vpop.f32.mrb[28].mxu0 }
 0x430   :  { %v924_v15 = vmul.f32 %v1660_v10, %v917_v11  ;;  %v1547_v16 = vpop.f32.mrb[29].mxu0  ;;  %v1633_v10 = vld [vmem:[%s2103_s5] sm:$0xff]   ;;  %v1634_v11 = vld [vmem:[%s2103_s5 + $0x8] sm:$0xff]  }
 0x431   :  { %v920_v18 = vpop.f32.mrb[30].mxu0 }
 0x432   :  { %v1617_v19 = vpack.i.bf16 %v924_v15, %v463_v12  ;;  %v1548_v20 = vpop.f32.mrb[31].mxu0 }
 0x434   :  { %1618 = vrot.lane.b32.xlu0 %v1617_v19, %s1780_s10 }
 0x437   :  { %v1027_v22 = vpop.f32.mrb[32].mxu0 }
 0x438   :  { %v1034_v24 = vmul.f32 %v1664_v21, %v1027_v22  ;;  %v1559_v25 = vpop.f32.mrb[33].mxu0 }
 0x439   :  { %v1030_v26 = vpop.f32.mrb[34].mxu0  ;;  %v1398_v25 = vld [vmem:[#allocation7 + $0x3] ss:$0 sm:$0xff] }
 0x43a   :  { %v1622_v27 = vpack.i.bf16 %v1034_v24, %v573_v23  ;;  %v1560_v28 = vpop.f32.mrb[35].mxu0 }
 0x43c   :  { %1623 = vrot.lane.b32.xlu1 %v1622_v27, %s1781_s4 }
 0x49e   :  { %v1614_v31 = vpop.permute.xlu1 %1613 }
 0x49f   :  { %v1616_v34 = vunpack.i.h.bf16 %v1614_v31  ;;  %v1615_v36 = vunpack.i.l.bf16 %v1614_v31  ;;  %v1636_v31 = vld [vmem:[%s2103_s5 + $0x18] sm:$0xff]   ;;  %s1782_s5 = smov [#allocation9]  }
 0x4a0   :  { %s1359_s17 = sshll.u32 %s1782_s5, 4  ;;  %s1360_s17 = int_to_ptr.vmem [resolvable:$true] %s1359_s17 }
 0x4a1   :  { %v1047_v43 = vsel %vm136_vm2, %v704_v41, %v1616_v34  ;;  %v586_v14 = vsel %vm136_vm2, %v243_v40, %v1615_v36  ;;  %v1403_v41 = vld [vmem:[#allocation7 + $0x5] ss:$0 sm:$0xff]  ;;  %s1731_s18 = scalar_lea.vmem %s1360_s17, 256  ;;  %p1736_p6 = scmp.lt.s32.totalorder %s1360_s17, %s1360_s17 }
 0x4a2   :  { %p1732_p5 = scmp.ne.s32.totalorder %s1360_s17, %s1731_s18  ;;  %p1737_p7 = scmp.lt.s32.totalorder %s1731_s18, %s1731_s18 }
 0x4a4   :  { %p1738_p8 = por %p1737_p7, %p1736_p6 }
 0x4a6   :  { %v1619_v32 = vpop.permute.xlu0 %1618  ;;  %p1739_p9 = pnand %p1738_p8, %p1732_p5 }
 0x4a7   :  { %v1621_v38 = vunpack.i.h.bf16 %v1619_v32  ;;  %v1620_v39 = vunpack.i.l.bf16 %v1619_v32  ;;  %v1399_v32 = vld [vmem:[#allocation7 + $0x4] ss:$0 sm:$0xff] }
 0x4a9   :  { %v1048_v46 = vsel %vm587_vm6, %v1047_v43, %v1621_v38  ;;  %v588_v47 = vsel %vm587_vm6, %v586_v14, %v1620_v39 }
 0x4ae   :  { %v1624_v42 = vpop.permute.xlu1 %1623 }
 0x4af   :  { %v1626_v44 = vunpack.i.h.bf16 %v1624_v42  ;;  %v1625_v45 = vunpack.i.l.bf16 %v1624_v42 }
 0x4b1   :  { %v1049_v48 = vsel %vm589_vm7, %v1048_v46, %v1626_v44  ;;  %v590_v49 = vsel %vm589_vm7, %v588_v47, %v1625_v45 }
 0x4b2   :  { %v1050_v50 = vpack.c.bf16 %v1049_v48, %v590_v49 }
 0x4b4   :  { %1566 = vmatmul.mubr.msk.bf16.vlgmr.msra.gmra.mrb[32].mxu1 %vm81_vm1, %v1050_v50 }
 0x4b5   :  { %1585 = vmatprep.mubr.msk.bf16.mxu1 %vm1767_vm0, %v1766_v0  ;;  %1578 = vmatpush3.bf16.msra.mxu1 %v1633_v10 }
 0x4b6   :  { %1579 = vmatprep.subr.bf16.mxu1 %v1766_v0 }
 0x4b9   :  { %1580 = vmatpush3.bf16.msra.mxu1 %v1634_v11 }
 0x4ba   :  { %1581 = vmatprep.subr.bf16.mxu1 %v1766_v0 }
 0x4bd   :  { %1582 = vmatpush3.bf16.msra.mxu1 %v1635_v30 }
 0x4be   :  { %1583 = vmatprep.subr.bf16.mxu1 %v1766_v0 }
 0x4c1   :  { %1584 = vmatpush3.bf16.msra.mxu1 %v1636_v31 }
 0x587   :  { %v1109_v51 = vpop.f32.mrb[32].mxu1 }
 0x588   :  { %v1110_v52 = vadd.f32 %v1393_v35, %v1109_v51  ;;  %v1567_v53 = vpop.f32.mrb[33].mxu1 }
 0x589   :  { %v1112_v54 = vpop.f32.mrb[34].mxu1 }
 0x58a   :  { %v1113_v55 = vadd.f32 %v1393_v35, %v1112_v54  ;;  %v1568_v56 = vpop.f32.mrb[35].mxu1  ;;  %v1116_v57 = vadd.f32 %v1110_v52, %v1877_v3 }
 0x58c   :  { %v1118_v58 = vsel %vm81_vm1, %v1116_v57, 0.0  ;;  %v1117_v59 = vadd.f32 %v1113_v55, %v1882_v4  ;;  %v1632_v4 = vld [vmem:[#allocation4 + $0x8] sm:$0xff]  }
 0x58d   :  { %1119 = vadd.xlane.f32.xlu1 %v1118_v58  ;;  %1572 = vmatpush3.bf16.msra.mxu0 %v1632_v4 }
 0x58e   :  { %v1121_v60 = vsel %vm81_vm1, %v1117_v59, 0.0 }
 0x58f   :  { %1122 = vadd.xlane.f32.xlu0 %v1121_v60 }
 0x61a   :  { %v1120_v61 = vpop.xlane.xlu1 %1119 }
 0x61b   :  { %v1125_v62 = vmul.f32 0.03125, %v1120_v61 }
 0x61c   :  { %v1123_v63 = vpop.xlane.xlu0 %1122 }
 0x61d   :  { %v1127_v1 = vsub.f32 %v1116_v57, %v1125_v62  ;;  %v1126_v2 = vmul.f32 0.03125, %v1123_v63 }
 0x61f   :  { %v1128_v5 = vsub.f32 %v1117_v59, %v1126_v2  ;;  %v1129_v6 = vmul.f32 %v1127_v1, %v1127_v1 }
 0x621   :  { %v1131_v7 = vsel %vm81_vm1, %v1129_v6, 0.0  ;;  %v1130_v8 = vmul.f32 %v1128_v5, %v1128_v5 }
 0x622   :  { %1132 = vadd.xlane.f32.xlu0 %v1131_v7  ;;  %v1409_v7 = vld [vmem:[#allocation7 + $0x6] ss:$0 sm:$0xff] }
 0x623   :  { %v1134_v3 = vsel %vm81_vm1, %v1130_v8, 0.0 }
 0x624   :  { %1135 = vadd.xlane.f32.xlu1 %v1134_v3 }
 0x6af   :  { %v1133_v12 = vpop.xlane.xlu0 %1132 }
 0x6b0   :  { %v1137_v15 = vmul.f32 0.03125, %v1133_v12 }
 0x6b1   :  { %v1136_v16 = vpop.xlane.xlu1 %1135 }
 0x6b2   :  { %v1139_v17 = vadd.f32 1e-05, %v1137_v15  ;;  %v1138_v18 = vmul.f32 0.03125, %v1136_v16 }
 0x6b4   :  { %1669 = vrsqrt.f32 %v1139_v17  ;;  %v1140_v19 = vadd.f32 1e-05, %v1138_v18 }
 0x6b6   :  { %1671 = vrsqrt.f32 %v1140_v19 }
 0x6be   :  { %v1670_v20 = vpop.eup %1669 }
 0x6bf   :  { %v1143_v21 = vmul.f32 %v1670_v20, %v1127_v1 }
 0x6c0   :  { %v1672_v22 = vpop.eup %1671 }
 0x6c1   :  { %v1150_v23 = vmul.f32 %v1397_v13, %v1143_v21  ;;  %v1144_v24 = vmul.f32 %v1672_v22, %v1128_v5 }
 0x6c3   :  { %v1151_v26 = vmul.f32 %v1397_v13, %v1144_v24  ;;  %v1157_v27 = vadd.f32 %v1398_v25, %v1150_v23 }
 0x6c5   :  { %v1158_v28 = vadd.f32 %v1398_v25, %v1151_v26 }
 0x6c7   :  { %v1159_v29 = vpack.c.bf16 %v1158_v28, %v1157_v27 }
 0x6c9   :  { %1574 = vmatmul.mubr.msk.bf16.vlgmr.msra.gmra.mrb[36].mxu0 %vm81_vm1, %v1159_v29 }
 0x79c   :  { %v1218_v33 = vpop.f32.mrb[36].mxu0 }
 0x79d   :  { %v1575_v34 = vpop.f32.mrb[37].mxu0  ;;  %v1219_v37 = vadd.f32 %v1399_v32, %v1218_v33 }
 0x79e   :  { %v1221_v36 = vpop.f32.mrb[38].mxu0 }
 0x79f   :  { %v1222_v38 = vadd.f32 %v1399_v32, %v1221_v36  ;;  %v1576_v39 = vpop.f32.mrb[39].mxu0 }
 0x7a1   :  { %v1225_v40 = vpack.c.bf16 %v1222_v38, %v1219_v37 }
 0x7a3   :  { %1586 = vmatmul.mubr.msk.bf16.vlgmr.msra.gmra.mrb[36].mxu1 %vm1263_vm8, %v1225_v40 }
 0x876   :  { %v1301_v42 = vpop.f32.mrb[36].mxu1 }
 0x877   :  { %v1302_v43 = vadd.f32 %v1403_v41, %v1301_v42  ;;  %v1587_v14 = vpop.f32.mrb[37].mxu1 }
 0x878   :  { %v1304_v0 = vpop.f32.mrb[38].mxu1 }
 0x879   :  { %v1308_v44 = vmax.f32 %v1302_v43, 0.0  ;;  %v1305_v45 = vadd.f32 %v1403_v41, %v1304_v0  ;;  %v1588_v46 = vpop.f32.mrb[39].mxu1 }
 0x87b   :  { %v1309_v47 = vmax.f32 %v1305_v45, 0.0  ;;  %v1310_v48 = vadd.f32 %v1308_v44, %v1157_v27 }
 0x87d   :  { %v1312_v49 = vsel %vm81_vm1, %v1310_v48, 0.0  ;;  %v1311_v50 = vadd.f32 %v1309_v47, %v1158_v28 }
 0x87e   :  { %1313 = vadd.xlane.f32.xlu0 %v1312_v49 }
 0x87f   :  { %v1315_v35 = vsel %vm81_vm1, %v1311_v50, 0.0 }
 0x880   :  { %1316 = vadd.xlane.f32.xlu1 %v1315_v35 }
 0x90b   :  { %v1314_v51 = vpop.xlane.xlu0 %1313 }
 0x90c   :  { %v1318_v52 = vmul.f32 0.03125, %v1314_v51 }
 0x90d   :  { %v1317_v53 = vpop.xlane.xlu1 %1316 }
 0x90e   :  { %v1320_v54 = vsub.f32 %v1310_v48, %v1318_v52  ;;  %v1319_v55 = vmul.f32 0.03125, %v1317_v53 }
 0x910   :  { %v1321_v56 = vsub.f32 %v1311_v50, %v1319_v55  ;;  %v1322_v57 = vmul.f32 %v1320_v54, %v1320_v54 }
 0x912   :  { %v1324_v58 = vsel %vm81_vm1, %v1322_v57, 0.0  ;;  %v1323_v59 = vmul.f32 %v1321_v56, %v1321_v56 }
 0x913   :  { %1325 = vadd.xlane.f32.xlu0 %v1324_v58 }
 0x914   :  { %v1327_v60 = vsel %vm81_vm1, %v1323_v59, 0.0 }
 0x915   :  { %1328 = vadd.xlane.f32.xlu1 %v1327_v60 }
 0x9a0   :  { %v1326_v61 = vpop.xlane.xlu0 %1325 }
 0x9a1   :  { %v1330_v62 = vmul.f32 0.03125, %v1326_v61 }
 0x9a2   :  { %v1329_v63 = vpop.xlane.xlu1 %1328 }
 0x9a3   :  { %v1332_v1 = vadd.f32 1e-05, %v1330_v62  ;;  %v1331_v2 = vmul.f32 0.03125, %v1329_v63 }
 0x9a5   :  { %1673 = vrsqrt.f32 %v1332_v1  ;;  %v1333_v5 = vadd.f32 1e-05, %v1331_v2 }
 0x9a7   :  { %1675 = vrsqrt.f32 %v1333_v5 }
 0x9af   :  { %v1674_v6 = vpop.eup %1673 }
 0x9b0   :  { %v1336_v8 = vmul.f32 %v1674_v6, %v1320_v54 }
 0x9b1   :  { %v1676_v3 = vpop.eup %1675 }
 0x9b2   :  { %v1343_v4 = vmul.f32 %v1409_v7, %v1336_v8  ;;  %v1337_v10 = vmul.f32 %v1676_v3, %v1321_v56 }
 0x9b4   :  { %v1344_v11 = vmul.f32 %v1409_v7, %v1337_v10  ;;  %v1350_v12 = vadd.f32 %v1410_v9, %v1343_v4 }
 0x9b6   :  { %v1351_v15 = vadd.f32 %v1410_v9, %v1344_v11  ;;  %1352 = vst.msk [vmem:[#allocation9] sm:$0xff] %vm81_vm1, %v1350_v12 }
 0x9b8   :  { %1353 = vst.msk [vmem:[#allocation9 + $0x8] sm:$0xff] %vm81_vm1, %v1351_v15 }
 0x9b9   :  { %1742 = shalt.err (!%p1739_p9)
}
 0x9ba   :  { %s1743_s19 = scalar_lea.hbm %s2105_s7, 256 }
 0x9bb   :  { %p1744_p10 = scmp.ne.s32.totalorder %s2105_s7, %s1743_s19  ;;  %p1747_p11 = scmp.lt.u32.totalorder %s1743_s19, %s2105_s7 }
 0x9bd   :  { %p1749_p12 = pnand %p1747_p11, %p1744_p10 }
 0x9bf   :  { %1752 = shalt.err (!%p1749_p12)
}
 0x9c0   :  { %s1783_s24 = smov 128  }
 0x9c1   :  { %1365 = dma.vmem_to_hbm [thread:$0]  %s1360_s17, 256, %s2105_s7, [#allocation6], %s1783_s24, %s1783_s24, %s1779_s30  }
 0x9c2   :  { %1759 = dma.done.wait [#allocation6], 256  }
 0x9c3   :  { %1760 = vsyncadd [#allocation6], 4294967040 }
 0x9c4   :  { %1369 = vsyncpa [#allocation5], 1 }
 0x9c5   :  { %1370 = vsyncpa [#allocation8], 1 }
 0x9c6   :  { %1371 = vsyncpa [#allocation6], 1 }

</bundles_post_ra>
